<compile_context>
chip_gen: v6e
topology: v6e:2x2x1
jax: 0.10.0
libtpu: 0.0.40
codegen_flags: <defaults>
</compile_context>

<pallas_src>
import jax
import jax.numpy as jnp
from jax.experimental import pallas as pl
from jax.experimental.pallas import tpu as pltpu


def _build_masks(H, W):
    """(10, 2*H*W): rows 0..8 = per-tap zero-pad validity masks (tap = ky*3+kx),
    row 9 = interior (valid-conv) mask.  Positions [0,HW) and [HW,2HW) are the
    two images fused along the lane axis; masks are per-image row/col based."""
    HW = H * W
    lane = jnp.arange(2 * HW, dtype=jnp.int32)
    c = lane % W
    r = (lane % HW) // W
    rows = []
    for ky in range(3):
        for kx in range(3):
            dy, dx = ky - 1, kx - 1
            ok = ((c + dx >= 0) & (c + dx <= W - 1) &
                  (r + dy >= 0) & (r + dy <= H - 1))
            rows.append(ok.astype(jnp.float32))
    interior = ((r >= 1) & (r <= H - 2) &
                (c >= 1) & (c <= W - 2)).astype(jnp.float32)
    rows.append(interior)
    return jnp.stack(rows, axis=0)


def _make_fused_kernel(B, C, H, W):
    HW = H * W
    TOT = 2 * HW
    C2 = C // 2
    Hv, Wv = H - 2, W - 2                     # valid-conv output spatial dims
    inv_g2 = 1.0 / float(C2 * H * W)          # gram normaliser for conv2 feats
    inv_g3 = 1.0 / float(1 * Hv * Wv)         # gram normaliser for conv3 feats
    inv_m1 = 1.0 / float(B * C2 * C2)         # mse mean over (B, C2, C2)
    inv_m2 = 1.0 / float(B * 1 * 1)           # mse mean over (B, 1, 1)
    f32 = jnp.float32

    taps = [(ky, kx, (ky - 1) * W + (kx - 1)) for ky in range(3) for kx in range(3)]

    def _sum_all(x):                          # (m, n) -> (1, 1)
        return jnp.sum(jnp.sum(x, axis=1, keepdims=True), axis=0, keepdims=True)

    def kernel(gt_ref, feat_ref, masks_ref, w0_ref, w1_ref, wc1_ref, w2_ref,
               w3_ref, o_ref):

        def rolled_tap(x, d, total):
            shift = (-d) % total              # out[i] = x[(i + d) mod total]
            return pltpu.roll(x, shift=shift, axis=1) if shift else x

        def conv3x3_c1(x_row, w_mat, total, relu):
            # Single-channel 3x3 "same" conv: x_row (1, total), w_mat (Cout, 9).
            # 9 XLU rolls + zero-pad masks + VPU broadcast multiply-adds.
            acc = None
            for ky, kx, d in taps:
                tap = ky * 3 + kx
                win = rolled_tap(x_row, d, total)                     # (1, total)
                if d != 0:                                            # centre tap needs no mask
                    win = win * masks_ref[tap:tap + 1, 0:total]
                term = w_mat[:, tap:tap + 1] * win                    # (Cout, total)
                acc = term if acc is None else acc + term
            return jnp.maximum(acc, 0.0) if relu else acc

        def conv3x3_out1(x, w_row, total):
            # Multi-channel -> 1 channel 3x3 "same" conv: x (C2, total),
            # w_row (1, C2*9).  Only the interior is consumed downstream, so
            # per-tap padding masks are unnecessary here.
            acc = jnp.zeros((1, total), f32)
            for ky, kx, d in taps:
                tap = ky * 3 + kx
                rolled = rolled_tap(x, d, total)                      # (C2, total)
                for ci in range(C2):
                    wk = w_row[0:1, ci * 9 + tap:ci * 9 + tap + 1]    # (1, 1)
                    acc = acc + wk * rolled[ci:ci + 1, :]
            return acc

        gt = gt_ref[0]          # (1, HW)
        feat = feat_ref[0]      # (1, HW)
        w0 = w0_ref[...]        # (C, 9)      conv[0]
        w1 = w1_ref[...]        # (1, C)      conv[2]  (1x1)
        wc1 = wc1_ref[...]      # (C, 9)      conv1[0]
        w2 = w2_ref[...]        # (C2, C)     conv2[0] (1x1)
        w3 = w3_ref[...]        # (1, C2*9)   conv3

        # self.conv: Conv2d(1,C,3,p=1) -> ReLU -> Conv2d(C,1,1)   (all bias=False)
        x0 = conv3x3_c1(gt, w0, HW, relu=True)                        # (C, HW)
        seg_atten = jnp.dot(w1, x0, preferred_element_type=f32)       # (1, HW)
        # TODO(synk): F.interpolate(bilinear, align_corners=True) branch is not
        # implemented; feat/seg spatial sizes are assumed equal (as constructed).

        # Fused seg/feat branch: both images side by side on the lane axis.
        slab = jnp.concatenate([seg_atten, feat], axis=1)             # (1, 2*HW)
        c1 = conv3x3_c1(slab, wc1, TOT, relu=True)                    # (C, 2*HW)
        c2 = jnp.maximum(jnp.dot(w2, c1, preferred_element_type=f32), 0.0)   # (C2, 2*HW)
        c3 = conv3x3_out1(c2, w3, TOT)                                # (1, 2*HW)

        # Raw gram matrices (1/(ch*h*w) normaliser folded in after the diff).
        c2_s = c2[:, 0:HW]
        c2_f = c2[:, HW:TOT]
        dims = (((1,), (1,)), ((), ()))
        g2_s = jax.lax.dot_general(c2_s, c2_s, dims, preferred_element_type=f32)
        g2_f = jax.lax.dot_general(c2_f, c2_f, dims, preferred_element_type=f32)

        interior = masks_ref[9:10, :]                                 # (1, 2*HW)
        c3m = c3 * interior            # interior of same-conv == valid conv3
        c3sq = c3m * c3m
        g3_s = jnp.sum(c3sq[:, 0:HW], axis=1, keepdims=True)          # (1, 1)
        g3_f = jnp.sum(c3sq[:, HW:TOT], axis=1, keepdims=True)        # (1, 1)

        d2 = (g2_f - g2_s) * inv_g2
        l1 = _sum_all(d2 * d2) * inv_m1                               # (1, 1)
        d3 = (g3_f - g3_s) * inv_g3
        l2 = (d3 * d3) * inv_m2                                       # (1, 1)

        # Lane-dense per-batch partials: l1 -> lane 0, l2 -> lane 1.
        lane = jax.lax.broadcasted_iota(jnp.int32, (1, 128), 1)
        row = jnp.where(lane == 0, l1, 0.0) + jnp.where(lane == 1, l2, 0.0)
        o_ref[0] = row

    return kernel


def class_seg_loss_forward(params, feat_atten, gtmasks):
    """feat_atten: (B, 1, H, W); gtmasks: (B, H, W). Returns (loss1, loss2)."""
    B, _, H, W = feat_atten.shape
    C = params["conv_w0"].shape[0]
    C2 = C // 2
    HW = H * W
    TOT = 2 * HW

    gt = gtmasks.astype(jnp.float32).reshape(B, 1, HW)
    feat = feat_atten.astype(jnp.float32).reshape(B, 1, HW)
    masks = _build_masks(H, W)                                   # (10, 2*HW)
    w0 = params["conv_w0"].reshape(C, 9).astype(jnp.float32)
    w1 = params["conv_w1"].reshape(1, C).astype(jnp.float32)
    wc1 = params["conv1_w"].reshape(C, 9).astype(jnp.float32)
    w2 = params["conv2_w"].reshape(C2, C).astype(jnp.float32)
    w3 = params["conv3_w"].reshape(1, C2 * 9).astype(jnp.float32)

    partial = pl.pallas_call(
        _make_fused_kernel(B, C, H, W),
        out_shape=jax.ShapeDtypeStruct((B, 1, 128), jnp.float32),
        grid=(B,),
        in_specs=[
            pl.BlockSpec((1, 1, HW), lambda b: (b, 0, 0)),
            pl.BlockSpec((1, 1, HW), lambda b: (b, 0, 0)),
            pl.BlockSpec((10, TOT), lambda b: (0, 0)),
            pl.BlockSpec((C, 9), lambda b: (0, 0)),
            pl.BlockSpec((1, C), lambda b: (0, 0)),
            pl.BlockSpec((C, 9), lambda b: (0, 0)),
            pl.BlockSpec((C2, C), lambda b: (0, 0)),
            pl.BlockSpec((1, C2 * 9), lambda b: (0, 0)),
        ],
        out_specs=pl.BlockSpec((1, 1, 128), lambda b: (b, 0, 0)),
        compiler_params=pltpu.CompilerParams(
            dimension_semantics=("parallel",)),
    )(gt, feat, masks, w0, w1, wc1, w2, w3)

    loss1 = jnp.sum(partial[:, 0, 0])
    loss2 = jnp.sum(partial[:, 0, 1])
    return loss1, loss2


# ----------------------------------------------------------------------------
# ClassSegLoss parameters (deterministic init; all convs are bias=False in the
# reference module, so only weights are needed).
# ----------------------------------------------------------------------------
def init_params(key, channuls):
    C = channuls
    keys = jax.random.split(key, 5)

    def w(k, shape):
        fan_in = shape[1] * shape[2] * shape[3]
        return jax.random.normal(k, shape, jnp.float32) * (2.0 / fan_in) ** 0.5

    return {
        "conv_w0": w(keys[0], (C, 1, 3, 3)),        # conv[0]: Conv2d(1, C, 3, pad=1)
        "conv_w1": w(keys[1], (1, C, 1, 1)),        # conv[2]: Conv2d(C, 1, 1)
        "conv1_w": w(keys[2], (C, 1, 3, 3)),        # conv1[0]: Conv2d(1, C, 3, pad=1)
        "conv2_w": w(keys[3], (C // 2, C, 1, 1)),   # conv2[0]: Conv2d(C, C//2, 1)
        "conv3_w": w(keys[4], (1, C // 2, 3, 3)),   # conv3: Conv2d(C//2, 1, 3)
    }


if __name__ == "__main__":
    key = jax.random.PRNGKey(0)
    k_feat, k_mask, k_params = jax.random.split(key, 3)

    B, CHANNULS, H, W = 2, 4, 16, 16
    feat_atten = jax.random.normal(k_feat, (B, 1, H, W), jnp.float32)
    gtmasks = (jax.random.uniform(k_mask, (B, H, W)) > 0.5).astype(jnp.float32)
    params = init_params(k_params, CHANNULS)

    loss1, loss2 = jax.jit(class_seg_loss_forward)(params, feat_atten, gtmasks)
    jax.block_until_ready((loss1, loss2))
    print("KERNEL_OK")
</pallas_src>

<mosaic_0001>
module attributes {stable_mosaic.version = 11 : i64} {
  func.func @kernel(%arg0: i32, %arg1: memref<1x1x256xf32, #tpu.memory_space<vmem>>, %arg2: memref<1x1x256xf32, #tpu.memory_space<vmem>>, %arg3: memref<10x512xf32, #tpu.memory_space<vmem>>, %arg4: memref<4x9xf32, #tpu.memory_space<vmem>>, %arg5: memref<1x4xf32, #tpu.memory_space<vmem>>, %arg6: memref<4x9xf32, #tpu.memory_space<vmem>>, %arg7: memref<2x4xf32, #tpu.memory_space<vmem>>, %arg8: memref<1x18xf32, #tpu.memory_space<vmem>>, %arg9: memref<1x1x128xf32, #tpu.memory_space<vmem>>) attributes {dimension_semantics = [#tpu.dimension_semantics<parallel>], iteration_bounds = array<i64: 2>, scalar_prefetch = 0 : i64, scratch_operands = 0 : i64, tpu.core_type = #tpu.core_type<tc>, window_params = [{transform_indices = @transform_0, window_bounds = array<i64: 1, 1, 256>}, {transform_indices = @transform_1, window_bounds = array<i64: 1, 1, 256>}, {pipeline_mode = #tpu.pipeline_mode<synchronous>, transform_indices = @transform_2, window_bounds = array<i64: 10, 512>}, {pipeline_mode = #tpu.pipeline_mode<synchronous>, transform_indices = @transform_3, window_bounds = array<i64: 4, 9>}, {pipeline_mode = #tpu.pipeline_mode<synchronous>, transform_indices = @transform_4, window_bounds = array<i64: 1, 4>}, {pipeline_mode = #tpu.pipeline_mode<synchronous>, transform_indices = @transform_5, window_bounds = array<i64: 4, 9>}, {pipeline_mode = #tpu.pipeline_mode<synchronous>, transform_indices = @transform_6, window_bounds = array<i64: 2, 4>}, {pipeline_mode = #tpu.pipeline_mode<synchronous>, transform_indices = @transform_7, window_bounds = array<i64: 1, 18>}, {transform_indices = @transform_8, window_bounds = array<i64: 1, 1, 128>}]} {
    %c0 = arith.constant 0 : index
    %c0_0 = arith.constant 0 : index
    %c0_1 = arith.constant 0 : index
    %0 = vector.load %arg1[%c0, %c0_0, %c0_1] : memref<1x1x256xf32, #tpu.memory_space<vmem>>, vector<1x1x256xf32>
    %1 = vector.shape_cast %0 : vector<1x1x256xf32> to vector<1x256xf32>
    %c0_2 = arith.constant 0 : index
    %c0_3 = arith.constant 0 : index
    %c0_4 = arith.constant 0 : index
    %2 = vector.load %arg2[%c0_2, %c0_3, %c0_4] : memref<1x1x256xf32, #tpu.memory_space<vmem>>, vector<1x1x256xf32>
    %3 = vector.shape_cast %2 : vector<1x1x256xf32> to vector<1x256xf32>
    %c0_5 = arith.constant 0 : index
    %c0_6 = arith.constant 0 : index
    %4 = vector.load %arg4[%c0_5, %c0_6] : memref<4x9xf32, #tpu.memory_space<vmem>>, vector<4x9xf32>
    %c0_7 = arith.constant 0 : index
    %c0_8 = arith.constant 0 : index
    %5 = vector.load %arg5[%c0_7, %c0_8] : memref<1x4xf32, #tpu.memory_space<vmem>>, vector<1x4xf32>
    %c0_9 = arith.constant 0 : index
    %c0_10 = arith.constant 0 : index
    %6 = vector.load %arg6[%c0_9, %c0_10] : memref<4x9xf32, #tpu.memory_space<vmem>>, vector<4x9xf32>
    %c0_11 = arith.constant 0 : index
    %c0_12 = arith.constant 0 : index
    %7 = vector.load %arg7[%c0_11, %c0_12] : memref<2x4xf32, #tpu.memory_space<vmem>>, vector<2x4xf32>
    %c0_13 = arith.constant 0 : index
    %c0_14 = arith.constant 0 : index
    %8 = vector.load %arg8[%c0_13, %c0_14] : memref<1x18xf32, #tpu.memory_space<vmem>>, vector<1x18xf32>
    %c17_i32 = arith.constant 17 : i32
    %9 = tpu.dynamic_rotate %1 by %c17_i32 dim 1 : vector<1x256xf32>, i32 -> vector<1x256xf32>
    %c0_15 = arith.constant 0 : index
    %c0_16 = arith.constant 0 : index
    %10 = vector.load %arg3[%c0_15, %c0_16] : memref<10x512xf32, #tpu.memory_space<vmem>>, vector<1x256xf32>
    %11 = arith.mulf %9, %10 : vector<1x256xf32>
    %12 = vector.extract_strided_slice %4 {offsets = [0, 0], sizes = [4, 1], strides = [1, 1]} : vector<4x9xf32> to vector<4x1xf32>
    %13 = vector.broadcast %12 : vector<4x1xf32> to vector<4x256xf32>
    %14 = vector.broadcast %11 : vector<1x256xf32> to vector<4x256xf32>
    %15 = arith.mulf %13, %14 : vector<4x256xf32>
    %c16_i32 = arith.constant 16 : i32
    %16 = tpu.dynamic_rotate %1 by %c16_i32 dim 1 : vector<1x256xf32>, i32 -> vector<1x256xf32>
    %c1 = arith.constant 1 : index
    %c0_17 = arith.constant 0 : index
    %17 = vector.load %arg3[%c1, %c0_17] : memref<10x512xf32, #tpu.memory_space<vmem>>, vector<1x256xf32>
    %18 = arith.mulf %16, %17 : vector<1x256xf32>
    %19 = vector.extract_strided_slice %4 {offsets = [0, 1], sizes = [4, 1], strides = [1, 1]} : vector<4x9xf32> to vector<4x1xf32>
    %20 = vector.broadcast %19 : vector<4x1xf32> to vector<4x256xf32>
    %21 = vector.broadcast %18 : vector<1x256xf32> to vector<4x256xf32>
    %22 = arith.mulf %20, %21 : vector<4x256xf32>
    %23 = arith.addf %15, %22 : vector<4x256xf32>
    %c15_i32 = arith.constant 15 : i32
    %24 = tpu.dynamic_rotate %1 by %c15_i32 dim 1 : vector<1x256xf32>, i32 -> vector<1x256xf32>
    %c2 = arith.constant 2 : index
    %c0_18 = arith.constant 0 : index
    %25 = vector.load %arg3[%c2, %c0_18] : memref<10x512xf32, #tpu.memory_space<vmem>>, vector<1x256xf32>
    %26 = arith.mulf %24, %25 : vector<1x256xf32>
    %27 = vector.extract_strided_slice %4 {offsets = [0, 2], sizes = [4, 1], strides = [1, 1]} : vector<4x9xf32> to vector<4x1xf32>
    %28 = vector.broadcast %27 : vector<4x1xf32> to vector<4x256xf32>
    %29 = vector.broadcast %26 : vector<1x256xf32> to vector<4x256xf32>
    %30 = arith.mulf %28, %29 : vector<4x256xf32>
    %31 = arith.addf %23, %30 : vector<4x256xf32>
    %c1_i32 = arith.constant 1 : i32
    %32 = tpu.dynamic_rotate %1 by %c1_i32 dim 1 : vector<1x256xf32>, i32 -> vector<1x256xf32>
    %c3 = arith.constant 3 : index
    %c0_19 = arith.constant 0 : index
    %33 = vector.load %arg3[%c3, %c0_19] : memref<10x512xf32, #tpu.memory_space<vmem>>, vector<1x256xf32>
    %34 = arith.mulf %32, %33 : vector<1x256xf32>
    %35 = vector.extract_strided_slice %4 {offsets = [0, 3], sizes = [4, 1], strides = [1, 1]} : vector<4x9xf32> to vector<4x1xf32>
    %36 = vector.broadcast %35 : vector<4x1xf32> to vector<4x256xf32>
    %37 = vector.broadcast %34 : vector<1x256xf32> to vector<4x256xf32>
    %38 = arith.mulf %36, %37 : vector<4x256xf32>
    %39 = arith.addf %31, %38 : vector<4x256xf32>
    %40 = vector.extract_strided_slice %4 {offsets = [0, 4], sizes = [4, 1], strides = [1, 1]} : vector<4x9xf32> to vector<4x1xf32>
    %41 = vector.broadcast %40 : vector<4x1xf32> to vector<4x256xf32>
    %42 = vector.broadcast %1 : vector<1x256xf32> to vector<4x256xf32>
    %43 = arith.mulf %41, %42 : vector<4x256xf32>
    %44 = arith.addf %39, %43 : vector<4x256xf32>
    %c255_i32 = arith.constant 255 : i32
    %45 = tpu.dynamic_rotate %1 by %c255_i32 dim 1 : vector<1x256xf32>, i32 -> vector<1x256xf32>
    %c5 = arith.constant 5 : index
    %c0_20 = arith.constant 0 : index
    %46 = vector.load %arg3[%c5, %c0_20] : memref<10x512xf32, #tpu.memory_space<vmem>>, vector<1x256xf32>
    %47 = arith.mulf %45, %46 : vector<1x256xf32>
    %48 = vector.extract_strided_slice %4 {offsets = [0, 5], sizes = [4, 1], strides = [1, 1]} : vector<4x9xf32> to vector<4x1xf32>
    %49 = vector.broadcast %48 : vector<4x1xf32> to vector<4x256xf32>
    %50 = vector.broadcast %47 : vector<1x256xf32> to vector<4x256xf32>
    %51 = arith.mulf %49, %50 : vector<4x256xf32>
    %52 = arith.addf %44, %51 : vector<4x256xf32>
    %c241_i32 = arith.constant 241 : i32
    %53 = tpu.dynamic_rotate %1 by %c241_i32 dim 1 : vector<1x256xf32>, i32 -> vector<1x256xf32>
    %c6 = arith.constant 6 : index
    %c0_21 = arith.constant 0 : index
    %54 = vector.load %arg3[%c6, %c0_21] : memref<10x512xf32, #tpu.memory_space<vmem>>, vector<1x256xf32>
    %55 = arith.mulf %53, %54 : vector<1x256xf32>
    %56 = vector.extract_strided_slice %4 {offsets = [0, 6], sizes = [4, 1], strides = [1, 1]} : vector<4x9xf32> to vector<4x1xf32>
    %57 = vector.broadcast %56 : vector<4x1xf32> to vector<4x256xf32>
    %58 = vector.broadcast %55 : vector<1x256xf32> to vector<4x256xf32>
    %59 = arith.mulf %57, %58 : vector<4x256xf32>
    %60 = arith.addf %52, %59 : vector<4x256xf32>
    %c240_i32 = arith.constant 240 : i32
    %61 = tpu.dynamic_rotate %1 by %c240_i32 dim 1 : vector<1x256xf32>, i32 -> vector<1x256xf32>
    %c7 = arith.constant 7 : index
    %c0_22 = arith.constant 0 : index
    %62 = vector.load %arg3[%c7, %c0_22] : memref<10x512xf32, #tpu.memory_space<vmem>>, vector<1x256xf32>
    %63 = arith.mulf %61, %62 : vector<1x256xf32>
    %64 = vector.extract_strided_slice %4 {offsets = [0, 7], sizes = [4, 1], strides = [1, 1]} : vector<4x9xf32> to vector<4x1xf32>
    %65 = vector.broadcast %64 : vector<4x1xf32> to vector<4x256xf32>
    %66 = vector.broadcast %63 : vector<1x256xf32> to vector<4x256xf32>
    %67 = arith.mulf %65, %66 : vector<4x256xf32>
    %68 = arith.addf %60, %67 : vector<4x256xf32>
    %c239_i32 = arith.constant 239 : i32
    %69 = tpu.dynamic_rotate %1 by %c239_i32 dim 1 : vector<1x256xf32>, i32 -> vector<1x256xf32>
    %c8 = arith.constant 8 : index
    %c0_23 = arith.constant 0 : index
    %70 = vector.load %arg3[%c8, %c0_23] : memref<10x512xf32, #tpu.memory_space<vmem>>, vector<1x256xf32>
    %71 = arith.mulf %69, %70 : vector<1x256xf32>
    %72 = vector.extract_strided_slice %4 {offsets = [0, 8], sizes = [4, 1], strides = [1, 1]} : vector<4x9xf32> to vector<4x1xf32>
    %73 = vector.broadcast %72 : vector<4x1xf32> to vector<4x256xf32>
    %74 = vector.broadcast %71 : vector<1x256xf32> to vector<4x256xf32>
    %75 = arith.mulf %73, %74 : vector<4x256xf32>
    %76 = arith.addf %68, %75 : vector<4x256xf32>
    %cst = arith.constant 0.000000e+00 : f32
    %77 = vector.broadcast %cst : f32 to vector<4x256xf32>
    %78 = arith.maximumf %76, %77 : vector<4x256xf32>
    %cst_24 = arith.constant dense<0.000000e+00> : vector<1x256xf32>
    %79 = tpu.matmul %5, %78, %cst_24 {dimension_numbers = #tpu.dot_dimension_numbers<[1], [0], [0], [1], [0, 0, 1, 1], [], []>} : vector<1x4xf32>, vector<4x256xf32>, vector<1x256xf32> -> vector<1x256xf32>
    %80 = tpu.concatenate %79, %3 in 1 : vector<1x256xf32>, vector<1x256xf32> -> vector<1x512xf32>
    %c17_i32_25 = arith.constant 17 : i32
    %81 = tpu.dynamic_rotate %80 by %c17_i32_25 dim 1 : vector<1x512xf32>, i32 -> vector<1x512xf32>
    %c0_26 = arith.constant 0 : index
    %c0_27 = arith.constant 0 : index
    %82 = vector.load %arg3[%c0_26, %c0_27] : memref<10x512xf32, #tpu.memory_space<vmem>>, vector<1x512xf32>
    %83 = arith.mulf %81, %82 : vector<1x512xf32>
    %84 = vector.extract_strided_slice %6 {offsets = [0, 0], sizes = [4, 1], strides = [1, 1]} : vector<4x9xf32> to vector<4x1xf32>
    %85 = vector.broadcast %84 : vector<4x1xf32> to vector<4x512xf32>
    %86 = vector.broadcast %83 : vector<1x512xf32> to vector<4x512xf32>
    %87 = arith.mulf %85, %86 : vector<4x512xf32>
    %c16_i32_28 = arith.constant 16 : i32
    %88 = tpu.dynamic_rotate %80 by %c16_i32_28 dim 1 : vector<1x512xf32>, i32 -> vector<1x512xf32>
    %c1_29 = arith.constant 1 : index
    %c0_30 = arith.constant 0 : index
    %89 = vector.load %arg3[%c1_29, %c0_30] : memref<10x512xf32, #tpu.memory_space<vmem>>, vector<1x512xf32>
    %90 = arith.mulf %88, %89 : vector<1x512xf32>
    %91 = vector.extract_strided_slice %6 {offsets = [0, 1], sizes = [4, 1], strides = [1, 1]} : vector<4x9xf32> to vector<4x1xf32>
    %92 = vector.broadcast %91 : vector<4x1xf32> to vector<4x512xf32>
    %93 = vector.broadcast %90 : vector<1x512xf32> to vector<4x512xf32>
    %94 = arith.mulf %92, %93 : vector<4x512xf32>
    %95 = arith.addf %87, %94 : vector<4x512xf32>
    %c15_i32_31 = arith.constant 15 : i32
    %96 = tpu.dynamic_rotate %80 by %c15_i32_31 dim 1 : vector<1x512xf32>, i32 -> vector<1x512xf32>
    %c2_32 = arith.constant 2 : index
    %c0_33 = arith.constant 0 : index
    %97 = vector.load %arg3[%c2_32, %c0_33] : memref<10x512xf32, #tpu.memory_space<vmem>>, vector<1x512xf32>
    %98 = arith.mulf %96, %97 : vector<1x512xf32>
    %99 = vector.extract_strided_slice %6 {offsets = [0, 2], sizes = [4, 1], strides = [1, 1]} : vector<4x9xf32> to vector<4x1xf32>
    %100 = vector.broadcast %99 : vector<4x1xf32> to vector<4x512xf32>
    %101 = vector.broadcast %98 : vector<1x512xf32> to vector<4x512xf32>
    %102 = arith.mulf %100, %101 : vector<4x512xf32>
    %103 = arith.addf %95, %102 : vector<4x512xf32>
    %c1_i32_34 = arith.constant 1 : i32
    %104 = tpu.dynamic_rotate %80 by %c1_i32_34 dim 1 : vector<1x512xf32>, i32 -> vector<1x512xf32>
    %c3_35 = arith.constant 3 : index
    %c0_36 = arith.constant 0 : index
    %105 = vector.load %arg3[%c3_35, %c0_36] : memref<10x512xf32, #tpu.memory_space<vmem>>, vector<1x512xf32>
    %106 = arith.mulf %104, %105 : vector<1x512xf32>
    %107 = vector.extract_strided_slice %6 {offsets = [0, 3], sizes = [4, 1], strides = [1, 1]} : vector<4x9xf32> to vector<4x1xf32>
    %108 = vector.broadcast %107 : vector<4x1xf32> to vector<4x512xf32>
    %109 = vector.broadcast %106 : vector<1x512xf32> to vector<4x512xf32>
    %110 = arith.mulf %108, %109 : vector<4x512xf32>
    %111 = arith.addf %103, %110 : vector<4x512xf32>
    %112 = vector.extract_strided_slice %6 {offsets = [0, 4], sizes = [4, 1], strides = [1, 1]} : vector<4x9xf32> to vector<4x1xf32>
    %113 = vector.broadcast %112 : vector<4x1xf32> to vector<4x512xf32>
    %114 = vector.broadcast %80 : vector<1x512xf32> to vector<4x512xf32>
    %115 = arith.mulf %113, %114 : vector<4x512xf32>
    %116 = arith.addf %111, %115 : vector<4x512xf32>
    %c511_i32 = arith.constant 511 : i32
    %117 = tpu.dynamic_rotate %80 by %c511_i32 dim 1 : vector<1x512xf32>, i32 -> vector<1x512xf32>
    %c5_37 = arith.constant 5 : index
    %c0_38 = arith.constant 0 : index
    %118 = vector.load %arg3[%c5_37, %c0_38] : memref<10x512xf32, #tpu.memory_space<vmem>>, vector<1x512xf32>
    %119 = arith.mulf %117, %118 : vector<1x512xf32>
    %120 = vector.extract_strided_slice %6 {offsets = [0, 5], sizes = [4, 1], strides = [1, 1]} : vector<4x9xf32> to vector<4x1xf32>
    %121 = vector.broadcast %120 : vector<4x1xf32> to vector<4x512xf32>
    %122 = vector.broadcast %119 : vector<1x512xf32> to vector<4x512xf32>
    %123 = arith.mulf %121, %122 : vector<4x512xf32>
    %124 = arith.addf %116, %123 : vector<4x512xf32>
    %c497_i32 = arith.constant 497 : i32
    %125 = tpu.dynamic_rotate %80 by %c497_i32 dim 1 : vector<1x512xf32>, i32 -> vector<1x512xf32>
    %c6_39 = arith.constant 6 : index
    %c0_40 = arith.constant 0 : index
    %126 = vector.load %arg3[%c6_39, %c0_40] : memref<10x512xf32, #tpu.memory_space<vmem>>, vector<1x512xf32>
    %127 = arith.mulf %125, %126 : vector<1x512xf32>
    %128 = vector.extract_strided_slice %6 {offsets = [0, 6], sizes = [4, 1], strides = [1, 1]} : vector<4x9xf32> to vector<4x1xf32>
    %129 = vector.broadcast %128 : vector<4x1xf32> to vector<4x512xf32>
    %130 = vector.broadcast %127 : vector<1x512xf32> to vector<4x512xf32>
    %131 = arith.mulf %129, %130 : vector<4x512xf32>
    %132 = arith.addf %124, %131 : vector<4x512xf32>
    %c496_i32 = arith.constant 496 : i32
    %133 = tpu.dynamic_rotate %80 by %c496_i32 dim 1 : vector<1x512xf32>, i32 -> vector<1x512xf32>
    %c7_41 = arith.constant 7 : index
    %c0_42 = arith.constant 0 : index
    %134 = vector.load %arg3[%c7_41, %c0_42] : memref<10x512xf32, #tpu.memory_space<vmem>>, vector<1x512xf32>
    %135 = arith.mulf %133, %134 : vector<1x512xf32>
    %136 = vector.extract_strided_slice %6 {offsets = [0, 7], sizes = [4, 1], strides = [1, 1]} : vector<4x9xf32> to vector<4x1xf32>
    %137 = vector.broadcast %136 : vector<4x1xf32> to vector<4x512xf32>
    %138 = vector.broadcast %135 : vector<1x512xf32> to vector<4x512xf32>
    %139 = arith.mulf %137, %138 : vector<4x512xf32>
    %140 = arith.addf %132, %139 : vector<4x512xf32>
    %c495_i32 = arith.constant 495 : i32
    %141 = tpu.dynamic_rotate %80 by %c495_i32 dim 1 : vector<1x512xf32>, i32 -> vector<1x512xf32>
    %c8_43 = arith.constant 8 : index
    %c0_44 = arith.constant 0 : index
    %142 = vector.load %arg3[%c8_43, %c0_44] : memref<10x512xf32, #tpu.memory_space<vmem>>, vector<1x512xf32>
    %143 = arith.mulf %141, %142 : vector<1x512xf32>
    %144 = vector.extract_strided_slice %6 {offsets = [0, 8], sizes = [4, 1], strides = [1, 1]} : vector<4x9xf32> to vector<4x1xf32>
    %145 = vector.broadcast %144 : vector<4x1xf32> to vector<4x512xf32>
    %146 = vector.broadcast %143 : vector<1x512xf32> to vector<4x512xf32>
    %147 = arith.mulf %145, %146 : vector<4x512xf32>
    %148 = arith.addf %140, %147 : vector<4x512xf32>
    %cst_45 = arith.constant 0.000000e+00 : f32
    %149 = vector.broadcast %cst_45 : f32 to vector<4x512xf32>
    %150 = arith.maximumf %148, %149 : vector<4x512xf32>
    %cst_46 = arith.constant dense<0.000000e+00> : vector<2x512xf32>
    %151 = tpu.matmul %7, %150, %cst_46 {dimension_numbers = #tpu.dot_dimension_numbers<[1], [0], [0], [1], [0, 0, 1, 1], [], []>} : vector<2x4xf32>, vector<4x512xf32>, vector<2x512xf32> -> vector<2x512xf32>
    %cst_47 = arith.constant 0.000000e+00 : f32
    %152 = vector.broadcast %cst_47 : f32 to vector<2x512xf32>
    %153 = arith.maximumf %151, %152 : vector<2x512xf32>
    %cst_48 = arith.constant 0.000000e+00 : f32
    %154 = vector.broadcast %cst_48 : f32 to vector<1x512xf32>
    %c17_i32_49 = arith.constant 17 : i32
    %155 = tpu.dynamic_rotate %153 by %c17_i32_49 dim 1 : vector<2x512xf32>, i32 -> vector<2x512xf32>
    %156 = vector.extract_strided_slice %8 {offsets = [0, 0], sizes = [1, 1], strides = [1, 1]} : vector<1x18xf32> to vector<1x1xf32>
    %157 = vector.extract_strided_slice %155 {offsets = [0, 0], sizes = [1, 512], strides = [1, 1]} : vector<2x512xf32> to vector<1x512xf32>
    %158 = vector.broadcast %156 : vector<1x1xf32> to vector<1x512xf32>
    %159 = arith.mulf %158, %157 : vector<1x512xf32>
    %160 = arith.addf %154, %159 : vector<1x512xf32>
    %161 = vector.extract_strided_slice %8 {offsets = [0, 9], sizes = [1, 1], strides = [1, 1]} : vector<1x18xf32> to vector<1x1xf32>
    %162 = vector.extract_strided_slice %155 {offsets = [1, 0], sizes = [1, 512], strides = [1, 1]} : vector<2x512xf32> to vector<1x512xf32>
    %163 = vector.broadcast %161 : vector<1x1xf32> to vector<1x512xf32>
    %164 = arith.mulf %163, %162 : vector<1x512xf32>
    %165 = arith.addf %160, %164 : vector<1x512xf32>
    %c16_i32_50 = arith.constant 16 : i32
    %166 = tpu.dynamic_rotate %153 by %c16_i32_50 dim 1 : vector<2x512xf32>, i32 -> vector<2x512xf32>
    %167 = vector.extract_strided_slice %8 {offsets = [0, 1], sizes = [1, 1], strides = [1, 1]} : vector<1x18xf32> to vector<1x1xf32>
    %168 = vector.extract_strided_slice %166 {offsets = [0, 0], sizes = [1, 512], strides = [1, 1]} : vector<2x512xf32> to vector<1x512xf32>
    %169 = vector.broadcast %167 : vector<1x1xf32> to vector<1x512xf32>
    %170 = arith.mulf %169, %168 : vector<1x512xf32>
    %171 = arith.addf %165, %170 : vector<1x512xf32>
    %172 = vector.extract_strided_slice %8 {offsets = [0, 10], sizes = [1, 1], strides = [1, 1]} : vector<1x18xf32> to vector<1x1xf32>
    %173 = vector.extract_strided_slice %166 {offsets = [1, 0], sizes = [1, 512], strides = [1, 1]} : vector<2x512xf32> to vector<1x512xf32>
    %174 = vector.broadcast %172 : vector<1x1xf32> to vector<1x512xf32>
    %175 = arith.mulf %174, %173 : vector<1x512xf32>
    %176 = arith.addf %171, %175 : vector<1x512xf32>
    %c15_i32_51 = arith.constant 15 : i32
    %177 = tpu.dynamic_rotate %153 by %c15_i32_51 dim 1 : vector<2x512xf32>, i32 -> vector<2x512xf32>
    %178 = vector.extract_strided_slice %8 {offsets = [0, 2], sizes = [1, 1], strides = [1, 1]} : vector<1x18xf32> to vector<1x1xf32>
    %179 = vector.extract_strided_slice %177 {offsets = [0, 0], sizes = [1, 512], strides = [1, 1]} : vector<2x512xf32> to vector<1x512xf32>
    %180 = vector.broadcast %178 : vector<1x1xf32> to vector<1x512xf32>
    %181 = arith.mulf %180, %179 : vector<1x512xf32>
    %182 = arith.addf %176, %181 : vector<1x512xf32>
    %183 = vector.extract_strided_slice %8 {offsets = [0, 11], sizes = [1, 1], strides = [1, 1]} : vector<1x18xf32> to vector<1x1xf32>
    %184 = vector.extract_strided_slice %177 {offsets = [1, 0], sizes = [1, 512], strides = [1, 1]} : vector<2x512xf32> to vector<1x512xf32>
    %185 = vector.broadcast %183 : vector<1x1xf32> to vector<1x512xf32>
    %186 = arith.mulf %185, %184 : vector<1x512xf32>
    %187 = arith.addf %182, %186 : vector<1x512xf32>
    %c1_i32_52 = arith.constant 1 : i32
    %188 = tpu.dynamic_rotate %153 by %c1_i32_52 dim 1 : vector<2x512xf32>, i32 -> vector<2x512xf32>
    %189 = vector.extract_strided_slice %8 {offsets = [0, 3], sizes = [1, 1], strides = [1, 1]} : vector<1x18xf32> to vector<1x1xf32>
    %190 = vector.extract_strided_slice %188 {offsets = [0, 0], sizes = [1, 512], strides = [1, 1]} : vector<2x512xf32> to vector<1x512xf32>
    %191 = vector.broadcast %189 : vector<1x1xf32> to vector<1x512xf32>
    %192 = arith.mulf %191, %190 : vector<1x512xf32>
    %193 = arith.addf %187, %192 : vector<1x512xf32>
    %194 = vector.extract_strided_slice %8 {offsets = [0, 12], sizes = [1, 1], strides = [1, 1]} : vector<1x18xf32> to vector<1x1xf32>
    %195 = vector.extract_strided_slice %188 {offsets = [1, 0], sizes = [1, 512], strides = [1, 1]} : vector<2x512xf32> to vector<1x512xf32>
    %196 = vector.broadcast %194 : vector<1x1xf32> to vector<1x512xf32>
    %197 = arith.mulf %196, %195 : vector<1x512xf32>
    %198 = arith.addf %193, %197 : vector<1x512xf32>
    %199 = vector.extract_strided_slice %8 {offsets = [0, 4], sizes = [1, 1], strides = [1, 1]} : vector<1x18xf32> to vector<1x1xf32>
    %200 = vector.extract_strided_slice %153 {offsets = [0, 0], sizes = [1, 512], strides = [1, 1]} : vector<2x512xf32> to vector<1x512xf32>
    %201 = vector.broadcast %199 : vector<1x1xf32> to vector<1x512xf32>
    %202 = arith.mulf %201, %200 : vector<1x512xf32>
    %203 = arith.addf %198, %202 : vector<1x512xf32>
    %204 = vector.extract_strided_slice %8 {offsets = [0, 13], sizes = [1, 1], strides = [1, 1]} : vector<1x18xf32> to vector<1x1xf32>
    %205 = vector.extract_strided_slice %153 {offsets = [1, 0], sizes = [1, 512], strides = [1, 1]} : vector<2x512xf32> to vector<1x512xf32>
    %206 = vector.broadcast %204 : vector<1x1xf32> to vector<1x512xf32>
    %207 = arith.mulf %206, %205 : vector<1x512xf32>
    %208 = arith.addf %203, %207 : vector<1x512xf32>
    %c511_i32_53 = arith.constant 511 : i32
    %209 = tpu.dynamic_rotate %153 by %c511_i32_53 dim 1 : vector<2x512xf32>, i32 -> vector<2x512xf32>
    %210 = vector.extract_strided_slice %8 {offsets = [0, 5], sizes = [1, 1], strides = [1, 1]} : vector<1x18xf32> to vector<1x1xf32>
    %211 = vector.extract_strided_slice %209 {offsets = [0, 0], sizes = [1, 512], strides = [1, 1]} : vector<2x512xf32> to vector<1x512xf32>
    %212 = vector.broadcast %210 : vector<1x1xf32> to vector<1x512xf32>
    %213 = arith.mulf %212, %211 : vector<1x512xf32>
    %214 = arith.addf %208, %213 : vector<1x512xf32>
    %215 = vector.extract_strided_slice %8 {offsets = [0, 14], sizes = [1, 1], strides = [1, 1]} : vector<1x18xf32> to vector<1x1xf32>
    %216 = vector.extract_strided_slice %209 {offsets = [1, 0], sizes = [1, 512], strides = [1, 1]} : vector<2x512xf32> to vector<1x512xf32>
    %217 = vector.broadcast %215 : vector<1x1xf32> to vector<1x512xf32>
    %218 = arith.mulf %217, %216 : vector<1x512xf32>
    %219 = arith.addf %214, %218 : vector<1x512xf32>
    %c497_i32_54 = arith.constant 497 : i32
    %220 = tpu.dynamic_rotate %153 by %c497_i32_54 dim 1 : vector<2x512xf32>, i32 -> vector<2x512xf32>
    %221 = vector.extract_strided_slice %8 {offsets = [0, 6], sizes = [1, 1], strides = [1, 1]} : vector<1x18xf32> to vector<1x1xf32>
    %222 = vector.extract_strided_slice %220 {offsets = [0, 0], sizes = [1, 512], strides = [1, 1]} : vector<2x512xf32> to vector<1x512xf32>
    %223 = vector.broadcast %221 : vector<1x1xf32> to vector<1x512xf32>
    %224 = arith.mulf %223, %222 : vector<1x512xf32>
    %225 = arith.addf %219, %224 : vector<1x512xf32>
    %226 = vector.extract_strided_slice %8 {offsets = [0, 15], sizes = [1, 1], strides = [1, 1]} : vector<1x18xf32> to vector<1x1xf32>
    %227 = vector.extract_strided_slice %220 {offsets = [1, 0], sizes = [1, 512], strides = [1, 1]} : vector<2x512xf32> to vector<1x512xf32>
    %228 = vector.broadcast %226 : vector<1x1xf32> to vector<1x512xf32>
    %229 = arith.mulf %228, %227 : vector<1x512xf32>
    %230 = arith.addf %225, %229 : vector<1x512xf32>
    %c496_i32_55 = arith.constant 496 : i32
    %231 = tpu.dynamic_rotate %153 by %c496_i32_55 dim 1 : vector<2x512xf32>, i32 -> vector<2x512xf32>
    %232 = vector.extract_strided_slice %8 {offsets = [0, 7], sizes = [1, 1], strides = [1, 1]} : vector<1x18xf32> to vector<1x1xf32>
    %233 = vector.extract_strided_slice %231 {offsets = [0, 0], sizes = [1, 512], strides = [1, 1]} : vector<2x512xf32> to vector<1x512xf32>
    %234 = vector.broadcast %232 : vector<1x1xf32> to vector<1x512xf32>
    %235 = arith.mulf %234, %233 : vector<1x512xf32>
    %236 = arith.addf %230, %235 : vector<1x512xf32>
    %237 = vector.extract_strided_slice %8 {offsets = [0, 16], sizes = [1, 1], strides = [1, 1]} : vector<1x18xf32> to vector<1x1xf32>
    %238 = vector.extract_strided_slice %231 {offsets = [1, 0], sizes = [1, 512], strides = [1, 1]} : vector<2x512xf32> to vector<1x512xf32>
    %239 = vector.broadcast %237 : vector<1x1xf32> to vector<1x512xf32>
    %240 = arith.mulf %239, %238 : vector<1x512xf32>
    %241 = arith.addf %236, %240 : vector<1x512xf32>
    %c495_i32_56 = arith.constant 495 : i32
    %242 = tpu.dynamic_rotate %153 by %c495_i32_56 dim 1 : vector<2x512xf32>, i32 -> vector<2x512xf32>
    %243 = vector.extract_strided_slice %8 {offsets = [0, 8], sizes = [1, 1], strides = [1, 1]} : vector<1x18xf32> to vector<1x1xf32>
    %244 = vector.extract_strided_slice %242 {offsets = [0, 0], sizes = [1, 512], strides = [1, 1]} : vector<2x512xf32> to vector<1x512xf32>
    %245 = vector.broadcast %243 : vector<1x1xf32> to vector<1x512xf32>
    %246 = arith.mulf %245, %244 : vector<1x512xf32>
    %247 = arith.addf %241, %246 : vector<1x512xf32>
    %248 = vector.extract_strided_slice %8 {offsets = [0, 17], sizes = [1, 1], strides = [1, 1]} : vector<1x18xf32> to vector<1x1xf32>
    %249 = vector.extract_strided_slice %242 {offsets = [1, 0], sizes = [1, 512], strides = [1, 1]} : vector<2x512xf32> to vector<1x512xf32>
    %250 = vector.broadcast %248 : vector<1x1xf32> to vector<1x512xf32>
    %251 = arith.mulf %250, %249 : vector<1x512xf32>
    %252 = arith.addf %247, %251 : vector<1x512xf32>
    %253 = vector.extract_strided_slice %153 {offsets = [0, 0], sizes = [2, 256], strides = [1, 1]} : vector<2x512xf32> to vector<2x256xf32>
    %254 = vector.extract_strided_slice %153 {offsets = [0, 256], sizes = [2, 256], strides = [1, 1]} : vector<2x512xf32> to vector<2x256xf32>
    %cst_57 = arith.constant dense<0.000000e+00> : vector<2x2xf32>
    %255 = tpu.matmul %253, %253, %cst_57 {dimension_numbers = #tpu.dot_dimension_numbers<[1], [1], [0], [0], [0, 0, 1, 0], [], []>} : vector<2x256xf32>, vector<2x256xf32>, vector<2x2xf32> -> vector<2x2xf32>
    %cst_58 = arith.constant dense<0.000000e+00> : vector<2x2xf32>
    %256 = tpu.matmul %254, %254, %cst_58 {dimension_numbers = #tpu.dot_dimension_numbers<[1], [1], [0], [0], [0, 0, 1, 0], [], []>} : vector<2x256xf32>, vector<2x256xf32>, vector<2x2xf32> -> vector<2x2xf32>
    %c9 = arith.constant 9 : index
    %c0_59 = arith.constant 0 : index
    %257 = vector.load %arg3[%c9, %c0_59] : memref<10x512xf32, #tpu.memory_space<vmem>>, vector<1x512xf32>
    %258 = arith.mulf %252, %257 : vector<1x512xf32>
    %259 = arith.mulf %258, %258 : vector<1x512xf32>
    %260 = vector.extract_strided_slice %259 {offsets = [0, 0], sizes = [1, 256], strides = [1, 1]} : vector<1x512xf32> to vector<1x256xf32>
    %cst_60 = arith.constant dense<0.000000e+00> : vector<1xf32>
    %261 = vector.multi_reduction <add>, %260, %cst_60 [1] : vector<1x256xf32> to vector<1xf32>
    %262 = vector.shape_cast %261 : vector<1xf32> to vector<1x1xf32>
    %263 = vector.extract_strided_slice %259 {offsets = [0, 256], sizes = [1, 256], strides = [1, 1]} : vector<1x512xf32> to vector<1x256xf32>
    %cst_61 = arith.constant dense<0.000000e+00> : vector<1xf32>
    %264 = vector.multi_reduction <add>, %263, %cst_61 [1] : vector<1x256xf32> to vector<1xf32>
    %265 = vector.shape_cast %264 : vector<1xf32> to vector<1x1xf32>
    %266 = arith.subf %256, %255 : vector<2x2xf32>
    %cst_62 = arith.constant 0.001953125 : f32
    %267 = vector.broadcast %cst_62 : f32 to vector<2x2xf32>
    %268 = arith.mulf %266, %267 : vector<2x2xf32>
    %269 = arith.mulf %268, %268 : vector<2x2xf32>
    %cst_63 = arith.constant dense<0.000000e+00> : vector<2xf32>
    %270 = vector.multi_reduction <add>, %269, %cst_63 [1] : vector<2x2xf32> to vector<2xf32>
    %271 = vector.shape_cast %270 : vector<2xf32> to vector<2x1xf32>
    %cst_64 = arith.constant dense<0.000000e+00> : vector<1xf32>
    %272 = vector.multi_reduction <add>, %271, %cst_64 [0] : vector<2x1xf32> to vector<1xf32>
    %273 = vector.shape_cast %272 : vector<1xf32> to vector<1x1xf32>
    %cst_65 = arith.constant 1.250000e-01 : f32
    %274 = vector.broadcast %cst_65 : f32 to vector<1x1xf32>
    %275 = arith.mulf %273, %274 : vector<1x1xf32>
    %276 = arith.subf %265, %262 : vector<1x1xf32>
    %cst_66 = arith.constant 0.00510204071 : f32
    %277 = vector.broadcast %cst_66 : f32 to vector<1x1xf32>
    %278 = arith.mulf %276, %277 : vector<1x1xf32>
    %279 = arith.mulf %278, %278 : vector<1x1xf32>
    %cst_67 = arith.constant 5.000000e-01 : f32
    %280 = vector.broadcast %cst_67 : f32 to vector<1x1xf32>
    %281 = arith.mulf %279, %280 : vector<1x1xf32>
    %282 = tpu.iota {dimensions = array<i32: 1>} : vector<1x128xi32>
    %c0_i32 = arith.constant 0 : i32
    %283 = vector.broadcast %c0_i32 : i32 to vector<1x128xi32>
    %284 = arith.cmpi eq, %282, %283 : vector<1x128xi32>
    %cst_68 = arith.constant 0.000000e+00 : f32
    %285 = vector.shape_cast %275 : vector<1x1xf32> to vector<1x1xf32>
    %286 = vector.broadcast %285 : vector<1x1xf32> to vector<1x128xf32>
    %287 = vector.broadcast %cst_68 : f32 to vector<1x128xf32>
    %288 = arith.select %284, %286, %287 : vector<1x128xi1>, vector<1x128xf32>
    %c1_i32_69 = arith.constant 1 : i32
    %289 = vector.broadcast %c1_i32_69 : i32 to vector<1x128xi32>
    %290 = arith.cmpi eq, %282, %289 : vector<1x128xi32>
    %cst_70 = arith.constant 0.000000e+00 : f32
    %291 = vector.shape_cast %281 : vector<1x1xf32> to vector<1x1xf32>
    %292 = vector.broadcast %291 : vector<1x1xf32> to vector<1x128xf32>
    %293 = vector.broadcast %cst_70 : f32 to vector<1x128xf32>
    %294 = arith.select %290, %292, %293 : vector<1x128xi1>, vector<1x128xf32>
    %295 = arith.addf %288, %294 : vector<1x128xf32>
    %c0_71 = arith.constant 0 : index
    %c0_72 = arith.constant 0 : index
    %c0_73 = arith.constant 0 : index
    %296 = vector.load %arg9[%c0_71, %c0_72, %c0_73] : memref<1x1x128xf32, #tpu.memory_space<vmem>>, vector<1x1x128xf32>
    %297 = vector.shape_cast %296 : vector<1x1x128xf32> to vector<1x128xf32>
    %298 = vector.shape_cast %295 : vector<1x128xf32> to vector<1x1x128xf32>
    tpu.vector_store %arg9[%c0_71, %c0_72, %c0_73], %298 {strides = array<i32>} : memref<1x1x128xf32, #tpu.memory_space<vmem>>, vector<1x1x128xf32>,
    return
  }
  func.func @transform_0(%arg0: i32) -> (i32, i32, i32) {
    %c0_i32 = arith.constant 0 : i32
    %c0_i32_0 = arith.constant 0 : i32
    %c0_i32_1 = arith.constant 0 : i32
    return %arg0, %c0_i32, %c0_i32_0 : i32, i32, i32
  }
  func.func @transform_1(%arg0: i32) -> (i32, i32, i32) {
    %c0_i32 = arith.constant 0 : i32
    %c0_i32_0 = arith.constant 0 : i32
    %c0_i32_1 = arith.constant 0 : i32
    return %arg0, %c0_i32, %c0_i32_0 : i32, i32, i32
  }
  func.func @transform_2(%arg0: i32) -> (i32, i32) {
    %c0_i32 = arith.constant 0 : i32
    %c0_i32_0 = arith.constant 0 : i32
    %c0_i32_1 = arith.constant 0 : i32
    return %c0_i32, %c0_i32_0 : i32, i32
  }
  func.func @transform_3(%arg0: i32) -> (i32, i32) {
    %c0_i32 = arith.constant 0 : i32
    %c0_i32_0 = arith.constant 0 : i32
    %c0_i32_1 = arith.constant 0 : i32
    return %c0_i32, %c0_i32_0 : i32, i32
  }
  func.func @transform_4(%arg0: i32) -> (i32, i32) {
    %c0_i32 = arith.constant 0 : i32
    %c0_i32_0 = arith.constant 0 : i32
    %c0_i32_1 = arith.constant 0 : i32
    return %c0_i32, %c0_i32_0 : i32, i32
  }
  func.func @transform_5(%arg0: i32) -> (i32, i32) {
    %c0_i32 = arith.constant 0 : i32
    %c0_i32_0 = arith.constant 0 : i32
    %c0_i32_1 = arith.constant 0 : i32
    return %c0_i32, %c0_i32_0 : i32, i32
  }
  func.func @transform_6(%arg0: i32) -> (i32, i32) {
    %c0_i32 = arith.constant 0 : i32
    %c0_i32_0 = arith.constant 0 : i32
    %c0_i32_1 = arith.constant 0 : i32
    return %c0_i32, %c0_i32_0 : i32, i32
  }
  func.func @transform_7(%arg0: i32) -> (i32, i32) {
    %c0_i32 = arith.constant 0 : i32
    %c0_i32_0 = arith.constant 0 : i32
    %c0_i32_1 = arith.constant 0 : i32
    return %c0_i32, %c0_i32_0 : i32, i32
  }
  func.func @transform_8(%arg0: i32) -> (i32, i32, i32) {
    %c0_i32 = arith.constant 0 : i32
    %c0_i32_0 = arith.constant 0 : i32
    %c0_i32_1 = arith.constant 0 : i32
    return %arg0, %c0_i32, %c0_i32_0 : i32, i32, i32
  }
}

</mosaic_0001>

<bundles_post_ra>
// kernel: class_seg_loss_forward.1
= control target key start
LH: loop header
LB: loop body
LE: loop exit
PB: predicated region body
PF: predicated region fallthrough
CT: control target
= control target key end

     0   :  { %s2403_s27 = smov 0   ;;  %s3554_s0 = inlined_call_operand.vmem [shape: f32[2,1,256], index: 0, kind: input, shape index: {}]   ;;  %s3555_s1 = inlined_call_operand.vmem [shape: f32[2,1,256], index: 1, kind: input, shape index: {}]   ;;  %s3556_s2 = inlined_call_operand.vmem [shape: f32[10,512], index: 2, kind: input, shape index: {}]   ;;  %s3557_s3 = inlined_call_operand.vmem [shape: f32[4,9], index: 3, kind: input, shape index: {}]   ;;  %s3558_s4 = inlined_call_operand.vmem [shape: f32[1,4], index: 4, kind: input, shape index: {}]   ;;  %s3559_s5 = inlined_call_operand.vmem [shape: f32[4,9], index: 5, kind: input, shape index: {}]   ;;  %s3560_s6 = inlined_call_operand.vmem [shape: f32[2,4], index: 6, kind: input, shape index: {}]   ;;  %s3561_s7 = inlined_call_operand.vmem [shape: f32[1,18], index: 7, kind: input, shape index: {}]   ;;  %s3562_s8 = inlined_call_operand.vmem [shape: f32[2,1,128], index: 8, kind: output, shape index: {}]  }
   0x1 LB: > { %s2219_s28 = sadd.s32 4294967295, %s2329_s27   ;;  %p2223_p0 = scmp.ge.s32.totalorder %s2329_s27, 1  ;;  %s2329_s27 = sphi %s2403_s27, %s18_s27  }
   0x2   : > { %p270_p1 = scmp.lt.s32.totalorder %s2329_s27, 3 }
   0x4   : > { %p271_p2 = pnand %p2223_p0, %p270_p1 }
   0x6   : > { %274 = sbr.rel (%p271_p2) target bundleno = 1144 (0x478), region = 52 }
   0xb   : > { %v318_v0 = vld [vmem:[%s3557_s3] sm:$0xf]  ;;  %p305_p3 = scmp.lt.s32.totalorder %s2219_s28, 1  ;;  %v324_v1 = vlaneseq  ;;  %v2331_v2 = vmov 0   ;;  %v2332_v4 = vmov 2   ;;  %v2333_v7 = vmov 1  }
   0xc   : > { %2287 = vset.pattern.permute.xlu1 %v2331_v2  ;;  %2289 = vset.pattern.permute.xlu0 %v2332_v4  ;;  %s2334_s13 = smov 17   ;;  %s2335_s14 = smov 16   ;;  %v2336_v11 = vmov 4   ;;  %v2339_v12 = vmov 3   ;;  %v2341_v13 = vmov 5   ;;  %v2342_v14 = vmov 6  }
   0xd   : > { %359 = vperm.xlu1 %2287, %v318_v0   ;;  %s3584_s28 = smov (!%p305_p3, %s2219_s28), 1  ;;  %v2418_v3 = vshrl.u32 %v324_v1, 7  ;;  %s2337_s15 = smov 15   ;;  %v2345_v15 = vmov 7   ;;  %v2346_v16 = vmov 8   ;;  %v2348_v17 = vmov 0.0  }
   0xe   : > { %s2224_s9 = sshll.u32 %s3584_s28, 1  ;;  %s2338_s16 = smov 1   ;;  %723 = vmatprep.mubr.f32.mxu0 %v2348_v17  ;;  %1377 = vmatprep.mubr.f32.mxu1 %v2348_v17  ;;  %v2500_v21 = vld [vmem:[%s3559_s5] sm:$0xf]  ;;  %v2544_v32 = vand.u32 127, %v324_v1  ;;  %vm652_vm8 = vcmask 1043456  }
   0xf   : > { %v2423_v5 = vsub.s32 0, %v2418_v3  ;;  %s308_s12 = scalar_lea.vmem %s3554_s0, %s2224_s9  ;;  %v2431_v6 = vsub.s32 1, %v2418_v3  ;;  %s2340_s17 = smov 127   ;;  %v2226_v33 = vld [vmem:[%s3556_s2 + $0x1] ss:$8 sm:$0x3] }
  0x10   : > { %v316_v8 = vld [vmem:[%s308_s12] sm:$0x3]  ;;  %s2343_s18 = smov 113   ;;  %s2344_s19 = smov 112   ;;  %vm376_vm0 = vcmp.lt.s32.totalorder %v2544_v32, 16  ;;  %vm340_vm1 = vcmp.lt.s32.totalorder %v2544_v32, 17 }
  0x11   : > { %2288 = vset.pattern.permute.xlu1 %v2333_v7  ;;  %v2435_v9 = vrot.slane %v316_v8, %v2423_v5  ;;  %v2440_v10 = vrot.slane %v316_v8, %v2431_v6  ;;  %s2347_s20 = smov 111   ;;  %s312_s23 = scalar_lea.vmem %s3555_s1, %s2224_s9  ;;  %v343_v35 = vld [vmem:[%s3556_s2] ss:$8 sm:$0x3]  ;;  %v385_v37 = vrot.slane %v2226_v33, %v2423_v5  ;;  %v389_v38 = vrot.slane %v2226_v33, %v2431_v6 }
  0x12   : > { %395 = vperm.xlu1 %2288, %v318_v0   ;;  %v317_v18 = vld [vmem:[%s312_s23] sm:$0x3]  ;;  %v348_v41 = vrot.slane %v343_v35, %v2423_v5  ;;  %v352_v42 = vrot.slane %v343_v35, %v2431_v6  ;;  %v2227_v43 = vld [vmem:[%s3556_s2 + $0x2] ss:$8 sm:$0x3]  ;;  %vm414_vm2 = vcmp.lt.s32.totalorder %v2544_v32, 15 }
  0x13   : > { %334 = vrot.lane.b32.xlu0 %v2435_v9, %s2334_s13  ;;  %v2488_v19 = vrot.slane %v317_v18, %v2431_v6  ;;  %v2491_v20 = vrot.slane %v317_v18, %v2423_v5  ;;  %v2228_v50 = vld [vmem:[%s3556_s2 + $0x3] ss:$8 sm:$0x3]  ;;  %v423_v51 = vrot.slane %v2227_v43, %v2423_v5  ;;  %v427_v52 = vrot.slane %v2227_v43, %v2431_v6  ;;  %v2229_v1 = vld [vmem:[%s3556_s2 + $0x5] ss:$8 sm:$0x3] }
  0x14   : > { %vm452_vm3 = vcmp.lt.s32.totalorder %v2544_v32, 1  ;;  %v461_v57 = vrot.slane %v2228_v50, %v2423_v5  ;;  %v465_v58 = vrot.slane %v2228_v50, %v2431_v6  ;;  %vm498_vm4 = vcmp.lt.s32.totalorder %v2544_v32, 127 }
  0x15   : > { %vm536_vm5 = vcmp.lt.s32.totalorder %v2544_v32, 113  ;;  %vm574_vm6 = vcmp.lt.s32.totalorder %v2544_v32, 112  ;;  %vm612_vm7 = vcmp.lt.s32.totalorder %v2544_v32, 111  ;;  %vm648_vm9 = vcmask 31744  }
  0x16   : > { %372 = vrot.lane.b32.xlu1 %v2435_v9, %s2335_s14  ;;  %vm2137_vm10 = vcmask 9216   ;;  %vm2123_vm11 = vcmask 1040384   ;;  %vm2141_vm12 = vcmask 1041408   ;;  %vm2154_vm13 = vcmp.eq.s32.totalorder %v2544_v32, 0 }
  0x17   : > { %2291 = vset.pattern.permute.xlu1 %v2336_v11  ;;  %336 = vrot.lane.b32.xlu0 %v2440_v10, %s2334_s13  ;;  %vm2156_vm14 = vcmp.eq.s32.totalorder %v2544_v32, 1 }
  0x1a   : > { %412 = vrot.lane.b32.xlu1 %v2440_v10, %s2337_s15 }
  0x1b   : > { %374 = vrot.lane.b32.xlu0 %v2440_v10, %s2335_s14 }
  0x1e   : > { %448 = vrot.lane.b32.xlu1 %v2435_v9, %s2338_s16 }
  0x1f   : > { %410 = vrot.lane.b32.xlu0 %v2435_v9, %s2337_s15 }
  0x22   : > { %450 = vrot.lane.b32.xlu1 %v2440_v10, %s2338_s16 }
  0x23   : > { %433 = vperm.xlu0 %2289, %v318_v0  }
  0x26   : > { %487 = vperm.xlu1 %2291, %v318_v0  }
  0x27   : > { %2290 = vset.pattern.permute.xlu0 %v2339_v12 }
  0x28   : > { %471 = vperm.xlu0 %2290, %v318_v0  }
  0x2a   : > { %494 = vrot.lane.b32.xlu1 %v2435_v9, %s2340_s17 }
  0x2b   : > { %2292 = vset.pattern.permute.xlu1 %v2341_v13 }
  0x2c   : > { %496 = vrot.lane.b32.xlu0 %v2440_v10, %s2340_s17 }
  0x2d   : > { %2293 = vset.pattern.permute.xlu0 %v2342_v14 }
  0x2e   : > { %517 = vperm.xlu1 %2292, %v318_v0  }
  0x30   : > { %532 = vrot.lane.b32.xlu0 %v2435_v9, %s2343_s18 }
  0x32   : > { %534 = vrot.lane.b32.xlu1 %v2440_v10, %s2343_s18 }
  0x33   : > { %2300 = vset.pattern.permute.xlu1 %v2336_v11 }
  0x34   : > { %555 = vperm.xlu0 %2293, %v318_v0  }
  0x36   : > { %570 = vrot.lane.b32.xlu1 %v2435_v9, %s2344_s19 }
  0x38   : > { %2294 = vset.pattern.permute.xlu0 %v2345_v15 }
  0x39   : > { %593 = vperm.xlu0 %2294, %v318_v0  }
  0x3a   : > { %572 = vrot.lane.b32.xlu1 %v2440_v10, %s2344_s19 }
  0x3d   : > { %2295 = vset.pattern.permute.xlu0 %v2346_v16 }
  0x3e   : > { %608 = vrot.lane.b32.xlu1 %v2435_v9, %s2347_s20  ;;  %631 = vperm.xlu0 %2295, %v318_v0  }
  0x42   : > { %610 = vrot.lane.b32.xlu1 %v2440_v10, %s2347_s20  ;;  %2296 = vset.pattern.permute.xlu0 %v2331_v2 }
  0x43   : > { %745 = vrot.lane.b32.xlu0 %v2491_v20, %s2334_s13 }
  0x46   : > { %747 = vrot.lane.b32.xlu1 %v2488_v19, %s2334_s13 }
  0x47   : > { %781 = vperm.xlu0 %2296, %v2500_v21  }
  0x4a   : > { %810 = vrot.lane.b32.xlu1 %v2488_v19, %s2335_s14 }
  0x4b   : > { %808 = vrot.lane.b32.xlu0 %v2491_v20, %s2335_s14 }
  0x4c   : > { %2297 = vset.pattern.permute.xlu0 %v2333_v7 }
  0x4e   : > { %876 = vrot.lane.b32.xlu1 %v2488_v19, %s2337_s15 }
  0x4f   : > { %843 = vperm.xlu0 %2297, %v2500_v21  }
  0x52   : > { %942 = vrot.lane.b32.xlu1 %v2488_v19, %s2338_s16 }
  0x53   : > { %874 = vrot.lane.b32.xlu0 %v2491_v20, %s2337_s15 }
  0x54   : > { %2298 = vset.pattern.permute.xlu0 %v2332_v4 }
  0x56   : > { %1003 = vperm.xlu1 %2300, %v2500_v21  }
  0x57   : > { %909 = vperm.xlu0 %2298, %v2500_v21  }
  0x5a   : > { %1034 = vrot.lane.b32.xlu1 %v2491_v20, %s2340_s17 }
  0x5b   : > { %2301 = vset.pattern.permute.xlu1 %v2341_v13  ;;  %940 = vrot.lane.b32.xlu0 %v2491_v20, %s2338_s16 }
  0x5c   : > { %2299 = vset.pattern.permute.xlu0 %v2339_v12 }
  0x5e   : > { %1069 = vperm.xlu1 %2301, %v2500_v21  }
  0x5f   : > { %975 = vperm.xlu0 %2299, %v2500_v21  }
  0x62   : > { %1102 = vrot.lane.b32.xlu1 %v2488_v19, %s2343_s18 }
  0x63   : > { %1036 = vrot.lane.b32.xlu0 %v2488_v19, %s2340_s17 }
  0x64   : > { %2302 = vset.pattern.permute.xlu0 %v2342_v14 }
  0x66   : > { %1168 = vrot.lane.b32.xlu1 %v2488_v19, %s2344_s19 }
  0x67   : > { %1100 = vrot.lane.b32.xlu0 %v2491_v20, %s2343_s18 }
  0x6b   : > { %1135 = vperm.xlu0 %2302, %v2500_v21  }
  0x6f   : > { %1166 = vrot.lane.b32.xlu0 %v2491_v20, %s2344_s19 }
  0x70   : > { %2303 = vset.pattern.permute.xlu0 %v2345_v15 }
  0x73   : > { %1201 = vperm.xlu0 %2303, %v2500_v21  }
  0x77   : > { %2304 = vset.pattern.permute.xlu0 %v2346_v16 }
  0x85   : > { %v335_v23 = vpop.permute.xlu0 %334 }
  0x88   : > { %v2541_v22 = vpop.permute.xlu1 %359 }
  0x89   : > { %v337_v25 = vpop.permute.xlu0 %336 }
  0x8a   : > { %v341_v45 = vsel %vm340_vm1, %v335_v23, %v337_v25  ;;  %v342_v46 = vsel %vm340_vm1, %v337_v25, %v335_v23  ;;  %v2230_v23 = vld [vmem:[%s3556_s2 + $0x6] ss:$8 sm:$0x3] }
  0x8b   : > { %v355_v53 = vmul.f32 %v348_v41, %v342_v46  ;;  %v356_v54 = vmul.f32 %v352_v42, %v341_v45  ;;  %v2231_v46 = vld [vmem:[%s3556_s2 + $0x7] ss:$8 sm:$0x3] }
  0x8d   : > { %v396_v24 = vpop.permute.xlu1 %395  ;;  %v375_v27 = vpop.permute.xlu0 %374  ;;  %v365_v25 = vrot.slane %v355_v53, %v2423_v5 }
  0x8f   : > { %v370_v43 = vmul.f32 %v365_v25, %v2541_v22 }
  0x91   : > { %v373_v26 = vpop.permute.xlu1 %372  ;;  %v411_v30 = vpop.permute.xlu0 %410 }
  0x92   : > { %v377_v39 = vsel %vm376_vm0, %v373_v26, %v375_v27  ;;  %v378_v40 = vsel %vm376_vm0, %v375_v27, %v373_v26  ;;  %v369_v26 = vrot.slane %v356_v54, %v2423_v5 }
  0x93   : > { %v392_v48 = vmul.f32 %v385_v37, %v378_v40  ;;  %v393_v49 = vmul.f32 %v389_v38, %v377_v39  ;;  %v545_v37 = vrot.slane %v2230_v23, %v2423_v5 }
  0x94   : > { %v371_v45 = vmul.f32 %v369_v26, %v2541_v22 }
  0x95   : > { %v413_v28 = vpop.permute.xlu1 %412  ;;  %v401_v61 = vrot.slane %v392_v48, %v2423_v5  ;;  %v405_v62 = vrot.slane %v393_v49, %v2423_v5 }
  0x96   : > { %v415_v55 = vsel %vm414_vm2, %v411_v30, %v413_v28  ;;  %v416_v56 = vsel %vm414_vm2, %v413_v28, %v411_v30  ;;  %v511_v30 = vrot.slane %v2229_v1, %v2431_v6 }
  0x97   : > { %v430_v8 = vmul.f32 %v423_v51, %v416_v56  ;;  %v431_v18 = vmul.f32 %v427_v52, %v415_v55  ;;  %v406_v33 = vmul.f32 %v401_v61, %v396_v24  ;;  %v407_v35 = vmul.f32 %v405_v62, %v396_v24 }
  0x98   : > { %v549_v24 = vrot.slane %v2230_v23, %v2431_v6 }
  0x99   : > { %v449_v29 = vpop.permute.xlu1 %448  ;;  %v439_v38 = vrot.slane %v430_v8, %v2423_v5  ;;  %v443_v39 = vrot.slane %v431_v18, %v2423_v5  ;;  %v408_v55 = vadd.f32 %v406_v33, %v370_v43  ;;  %v409_v56 = vadd.f32 %v407_v35, %v371_v45 }
  0x9d   : > { %v451_v31 = vpop.permute.xlu1 %450 }
  0x9e   : > { %v434_v34 = vpop.permute.xlu0 %433  ;;  %v453_v63 = vsel %vm452_vm3, %v449_v29, %v451_v31  ;;  %v454_v0 = vsel %vm452_vm3, %v451_v31, %v449_v29  ;;  %v507_v29 = vrot.slane %v2229_v1, %v2423_v5 }
  0x9f   : > { %v468_v27 = vmul.f32 %v461_v57, %v454_v0  ;;  %v469_v28 = vmul.f32 %v465_v58, %v453_v63  ;;  %v444_v48 = vmul.f32 %v439_v38, %v434_v34  ;;  %v445_v49 = vmul.f32 %v443_v39, %v434_v34 }
  0xa0   : > { %v583_v57 = vrot.slane %v2231_v46, %v2423_v5  ;;  %v587_v58 = vrot.slane %v2231_v46, %v2431_v6 }
  0xa1   : > { %v2553_v36 = vpop.permute.xlu1 %487  ;;  %v477_v50 = vrot.slane %v468_v27, %v2423_v5  ;;  %v481_v51 = vrot.slane %v469_v28, %v2423_v5  ;;  %v446_v61 = vadd.f32 %v444_v48, %v408_v55  ;;  %v447_v62 = vadd.f32 %v445_v49, %v409_v56 }
  0xa2   : > { %v491_v38 = vmul.f32 %v2553_v36, %v2440_v10 }
  0xa3   : > { %v2567_v44 = vpop.permute.xlu0 %471 }
  0xa4   : > { %v482_v34 = vmul.f32 %v477_v50, %v2567_v44 }
  0xa5   : > { %v495_v47 = vpop.permute.xlu1 %494 }
  0xa6   : > { %v484_v28 = vadd.f32 %v482_v34, %v446_v61 }
  0xa7   : > { %v497_v59 = vpop.permute.xlu0 %496 }
  0xa8   : > { %v499_v40 = vsel %vm498_vm4, %v495_v47, %v497_v59  ;;  %v500_v41 = vsel %vm498_vm4, %v497_v59, %v495_v47  ;;  %v483_v59 = vmul.f32 %v481_v51, %v2567_v44 }
  0xa9   : > { %v2586_v60 = vpop.permute.xlu1 %517  ;;  %v514_v52 = vmul.f32 %v507_v29, %v499_v40  ;;  %v515_v53 = vmul.f32 %v511_v30, %v500_v41  ;;  %v2232_v30 = vld [vmem:[%s3556_s2 + $0x20] ss:$8 sm:$0x3] }
  0xaa   : > { %v485_v29 = vadd.f32 %v483_v59, %v447_v62  ;;  %v621_v43 = vrot.slane %v2232_v30, %v2423_v5  ;;  %v625_v45 = vrot.slane %v2232_v30, %v2431_v6  ;;  %v2352_v30 = vmov 13  }
  0xab   : > { %v533_v42 = vpop.permute.xlu0 %532  ;;  %v523_v8 = vrot.slane %v514_v52, %v2423_v5  ;;  %v527_v18 = vrot.slane %v515_v53, %v2423_v5 }
  0xac   : > { %v493_v46 = vadd.f32 %v491_v38, %v485_v29  ;;  %v2351_v29 = vmov 10   ;;  %v2355_v38 = vmov 14  }
  0xad   : > { %v535_v31 = vpop.permute.xlu1 %534  ;;  %v528_v39 = vmul.f32 %v523_v8, %v2586_v60  ;;  %v529_v40 = vmul.f32 %v527_v18, %v2586_v60  ;;  %v319_v18 = vld [vmem:[%s3558_s4] sm:$0x1] }
  0xae   : > { %v537_v22 = vsel %vm536_vm5, %v533_v42, %v535_v31  ;;  %v538_v54 = vsel %vm536_vm5, %v535_v31, %v533_v42 }
  0xaf   : > { %v552_v63 = vmul.f32 %v545_v37, %v537_v22  ;;  %v553_v0 = vmul.f32 %v549_v24, %v538_v54  ;;  %v556_v44 = vpop.permute.xlu0 %555  ;;  %v490_v37 = vmul.f32 %v2553_v36, %v2435_v9  ;;  %v531_v10 = vadd.f32 %v529_v40, %v493_v46 }
  0xb1   : > { %v571_v47 = vpop.permute.xlu1 %570  ;;  %v561_v31 = vrot.slane %v552_v63, %v2423_v5  ;;  %v565_v33 = vrot.slane %v553_v0, %v2423_v5  ;;  %v492_v24 = vadd.f32 %v490_v37, %v484_v28 }
  0xb3   : > { %v566_v49 = vmul.f32 %v561_v31, %v556_v44  ;;  %v567_v9 = vmul.f32 %v565_v33, %v556_v44  ;;  %v530_v51 = vadd.f32 %v528_v39, %v492_v24  ;;  %v2353_v31 = vmov 12   ;;  %v2779_v24 = vld [vmem:[%s3556_s2 + $0x1] ss:$8 sm:$0xf] }
  0xb4   : > { %v594_v48 = vpop.permute.xlu0 %593 }
  0xb5   : > { %v573_v1 = vpop.permute.xlu1 %572  ;;  %v568_v55 = vadd.f32 %v566_v49, %v530_v51  ;;  %v569_v56 = vadd.f32 %v567_v9, %v531_v10  ;;  %v2800_v51 = vld [vmem:[%s3556_s2 + $0x2] ss:$8 sm:$0xf] }
  0xb6   : > { %v575_v23 = vsel %vm574_vm6, %v571_v47, %v573_v1  ;;  %v576_v25 = vsel %vm574_vm6, %v573_v1, %v571_v47 }
  0xb7   : > { %v590_v26 = vmul.f32 %v583_v57, %v575_v23  ;;  %v591_v27 = vmul.f32 %v587_v58, %v576_v25 }
  0xb9   : > { %v609_v35 = vpop.permute.xlu1 %608  ;;  %v599_v41 = vrot.slane %v590_v26, %v2423_v5  ;;  %v603_v42 = vrot.slane %v591_v27, %v2423_v5  ;;  %v632_v54 = vpop.permute.xlu0 %631 }
  0xbb   : > { %v604_v47 = vmul.f32 %v599_v41, %v594_v48  ;;  %v605_v52 = vmul.f32 %v603_v42, %v594_v48  ;;  %v2356_v41 = vmov 16  }
  0xbd   : > { %v611_v50 = vpop.permute.xlu1 %610  ;;  %v606_v34 = vadd.f32 %v604_v47, %v568_v55  ;;  %v607_v59 = vadd.f32 %v605_v52, %v569_v56  ;;  %v2715_v26 = vpop.permute.xlu0 %745 }
  0xbe   : > { %v613_v36 = vsel %vm612_vm7, %v609_v35, %v611_v50  ;;  %v614_v60 = vsel %vm612_vm7, %v611_v50, %v609_v35  ;;  %v2354_v35 = vmov 15  }
  0xbf   : > { %v628_v53 = vmul.f32 %v621_v43, %v613_v36  ;;  %v629_v22 = vmul.f32 %v625_v45, %v614_v60  ;;  %v2766_v43 = vsub.s32 3, %v2418_v3 }
  0xc1   : > { %v637_v57 = vrot.slane %v628_v53, %v2423_v5  ;;  %v641_v58 = vrot.slane %v629_v22, %v2423_v5  ;;  %v2717_v27 = vpop.permute.xlu1 %747  ;;  %v833_v49 = vrot.slane %v2779_v24, %v2766_v43  ;;  %v899_v60 = vrot.slane %v2800_v51, %v2766_v43  ;;  %v2813_v53 = vld [vmem:[%s3556_s2 + $0x3] ss:$8 sm:$0xf] }
  0xc2   : > { %v2723_v28 = vpop.permute.xlu0 %781 }
  0xc3   : > { %v642_v61 = vmul.f32 %v637_v57, %v632_v54  ;;  %v643_v62 = vmul.f32 %v641_v58, %v632_v54  ;;  %v965_v57 = vrot.slane %v2813_v53, %v2766_v43 }
  0xc5   : > { %v644_v63 = vadd.f32 %v642_v61, %v606_v34  ;;  %v645_v0 = vadd.f32 %v643_v62, %v607_v59  ;;  %v2725_v44 = vpop.permute.xlu1 %810 }
  0xc7   : > { %v647_v1 = vmax.f32 %v645_v0, 0.0  ;;  %v646_v8 = vmax.f32 %v644_v63, 0.0 }
  0xc9   : > { %2233 = vmatprep.subr.msk.mxu0 %vm652_vm8, %v647_v1  ;;  %v2833_v1 = vsub.s32 2, %v2418_v3 }
  0xca   : > { %2234 = vmatpush1.msk.msra.mxu0 %vm652_vm8, %v646_v8  ;;  %v2838_v8 = vld [vmem:[%s3556_s2 + $0x5] ss:$8 sm:$0xf] }
  0xcb   : > { %2235 = vmatmul.mubr.msk.f32.vlgmr.msra.gmra.mxu0 %vm648_vm9, %v319_v18  ;;  %v1055_v3 = vrot.slane %v2838_v8, %v2833_v1 }
  0xcc   : > { %1448 = vmatprep.mubr.f32.mxu0 %v2348_v17  ;;  %v2349_v17 = vmov 9  }
  0xcd   : > { %2305 = vset.pattern.permute.xlu1 %v2349_v17  ;;  %v2845_v17 = vld [vmem:[%s3556_s2 + $0x6] ss:$8 sm:$0xf] }
 0x18b   : > { %v2665_v23 = vpop.f32.mrf.mxu0 }
 0x18c   : > { %1096 = vrot.lane.b32.xlu0 %v2665_v23, %s2343_s18  ;;  %741 = vrot.lane.b32.xlu1 %v2665_v23, %s2334_s13 }
 0x18d   : > { %v2671_v25 = vpop.f32.mrf.mxu0 }
 0x190   : > { %804 = vrot.lane.b32.xlu1 %v2665_v23, %s2335_s14  ;;  %1032 = vrot.lane.b32.xlu0 %v2671_v25, %s2340_s17 }
 0x194   : > { %870 = vrot.lane.b32.xlu1 %v2665_v23, %s2337_s15  ;;  %1232 = vrot.lane.b32.xlu0 %v2491_v20, %s2347_s20 }
 0x198   : > { %936 = vrot.lane.b32.xlu1 %v2665_v23, %s2338_s16  ;;  %1267 = vperm.xlu0 %2304, %v2500_v21   ;;  %v2350_v21 = vmov 11  }
 0x19c   : > { %1030 = vrot.lane.b32.xlu1 %v2665_v23, %s2340_s17  ;;  %2307 = vset.pattern.permute.xlu0 %v2333_v7  ;;  %v2710_v7 = vld [vmem:[%s3561_s7] sm:$0x1] }
 0x19d   : > { %3568 = vst [vmem:[#allocation2_spill] sm:$0xff] %v2710_v7  ;;  %1529 = vperm.xlu0 %2307, %v2710_v7  }
 0x1a0   : > { %1162 = vrot.lane.b32.xlu1 %v2665_v23, %s2344_s19 }
 0x1a1   : > { %2310 = vset.pattern.permute.xlu0 %v2350_v21 }
 0x1a2   : > { %1601 = vperm.xlu0 %2310, %v2710_v7  }
 0x1a4   : > { %1228 = vrot.lane.b32.xlu1 %v2665_v23, %s2347_s20 }
 0x1a6   : > { %2311 = vset.pattern.permute.xlu0 %v2339_v12  ;;  %v2733_v12 = vpop.permute.xlu1 %876 }
 0x1a7   : > { %1641 = vperm.xlu0 %2311, %v2710_v7  }
 0x1a8   : > { %743 = vrot.lane.b32.xlu1 %v2671_v25, %s2334_s13 }
 0x1aa   : > { %v2740_v37 = vpop.permute.xlu1 %942 }
 0x1ab   : > { %2314 = vset.pattern.permute.xlu0 %v2352_v30 }
 0x1ac   : > { %806 = vrot.lane.b32.xlu1 %v2671_v25, %s2335_s14  ;;  %1701 = vperm.xlu0 %2314, %v2710_v7  }
 0x1b0   : > { %872 = vrot.lane.b32.xlu1 %v2671_v25, %s2337_s15  ;;  %2315 = vset.pattern.permute.xlu0 %v2341_v13  ;;  %v2749_v13 = vpop.permute.xlu1 %1003 }
 0x1b1   : > { %1741 = vperm.xlu0 %2315, %v2710_v7  }
 0x1b4   : > { %938 = vrot.lane.b32.xlu1 %v2671_v25, %s2338_s16  ;;  %v2752_v39 = vpop.permute.xlu1 %1034 }
 0x1b5   : > { %2318 = vset.pattern.permute.xlu0 %v2354_v35 }
 0x1b6   : > { %1813 = vperm.xlu0 %2318, %v2710_v7  }
 0x1b8   : > { %1098 = vrot.lane.b32.xlu1 %v2671_v25, %s2343_s18 }
 0x1ba   : > { %2319 = vset.pattern.permute.xlu0 %v2345_v15 }
 0x1bb   : > { %1853 = vperm.xlu0 %2319, %v2710_v7  }
 0x1bc   : > { %1164 = vrot.lane.b32.xlu1 %v2671_v25, %s2344_s19 }
 0x1c0   : > { %1230 = vrot.lane.b32.xlu1 %v2671_v25, %s2347_s20 }
 0x1c4   : > { %1234 = vrot.lane.b32.xlu1 %v2488_v19, %s2347_s20 }
 0x1c8   : > { %1489 = vperm.xlu1 %2305, %v2710_v7  }
 0x1cc   : > { %2306 = vset.pattern.permute.xlu1 %v2331_v2  ;;  %v2730_v2 = vpop.permute.xlu0 %808 }
 0x1cd   : > { %1473 = vperm.xlu1 %2306, %v2710_v7   ;;  %v812_v50 = vsel %vm376_vm0, %v2730_v2, %v2725_v44 }
 0x1ce   : > { %v841_v36 = vmul.f32 %v833_v49, %v812_v50  ;;  %v1021_v49 = vrot.slane %v2488_v19, %v2423_v5  ;;  %v1017_v19 = vrot.slane %v2491_v20, %v2423_v5 }
 0x1d0   : > { %v2738_v33 = vpop.permute.xlu0 %843  ;;  %v861_v55 = vrot.slane %v841_v36, %v2423_v5 }
 0x1d1   : > { %2308 = vset.pattern.permute.xlu1 %v2351_v29 }
 0x1d2   : > { %1545 = vperm.xlu1 %2308, %v2710_v7   ;;  %v865_v62 = vmul.f32 %v861_v55, %v2738_v33 }
 0x1d6   : > { %2309 = vset.pattern.permute.xlu1 %v2332_v4  ;;  %v2746_v4 = vpop.permute.xlu0 %874 }
 0x1d7   : > { %1585 = vperm.xlu1 %2309, %v2710_v7   ;;  %v878_v52 = vsel %vm414_vm2, %v2746_v4, %v2733_v12 }
 0x1d8   : > { %v907_v56 = vmul.f32 %v899_v60, %v878_v52 }
 0x1da   : > { %v2754_v40 = vpop.permute.xlu0 %909  ;;  %v927_v63 = vrot.slane %v907_v56, %v2423_v5 }
 0x1db   : > { %2312 = vset.pattern.permute.xlu1 %v2353_v31 }
 0x1dc   : > { %1657 = vperm.xlu1 %2312, %v2710_v7   ;;  %v931_v29 = vmul.f32 %v927_v63, %v2754_v40 }
 0x1de   : > { %v2760_v15 = vpop.permute.xlu0 %940 }
 0x1df   : > { %v944_v58 = vsel %vm452_vm3, %v2760_v15, %v2740_v37 }
 0x1e0   : > { %2313 = vset.pattern.permute.xlu1 %v2336_v11  ;;  %v2758_v11 = vpop.permute.xlu1 %1069  ;;  %v973_v0 = vmul.f32 %v965_v57, %v944_v58  ;;  %v1025_v57 = vmul.f32 %v1021_v49, %v2749_v13 }
 0x1e1   : > { %1685 = vperm.xlu1 %2313, %v2710_v7  }
 0x1e2   : > { %v2774_v45 = vpop.permute.xlu0 %975  ;;  %v993_v30 = vrot.slane %v973_v0, %v2423_v5 }
 0x1e4   : > { %v2763_v42 = vpop.permute.xlu1 %1102 }
 0x1e5   : > { %2316 = vset.pattern.permute.xlu1 %v2355_v38  ;;  %v1121_v38 = vrot.slane %v2845_v17, %v2833_v1 }
 0x1e6   : > { %1757 = vperm.xlu1 %2316, %v2710_v7   ;;  %v2791_v9 = vpop.permute.xlu0 %1036 }
 0x1e7   : > { %v1038_v35 = vsel %vm498_vm4, %v2752_v39, %v2791_v9 }
 0x1e8   : > { %v2783_v48 = vpop.permute.xlu1 %1168  ;;  %v1066_v36 = vmul.f32 %v1055_v3, %v1038_v35  ;;  %v2907_v35 = vmul.f32 %v1017_v19, %v2749_v13  ;;  %v1125_v19 = vrot.slane %v2845_v17, %v2766_v43 }
 0x1ea   : > { %2317 = vset.pattern.permute.xlu1 %v2342_v14  ;;  %v2772_v14 = vld [vmem:[%s3556_s2] ss:$8 sm:$0xf]  ;;  %v2804_v47 = vpop.permute.xlu0 %1100 }
 0x1eb   : > { %1797 = vperm.xlu1 %2317, %v2710_v7   ;;  %v770_v46 = vrot.slane %v2772_v14, %v2766_v43 }
 0x1ee   : > { %v2827_v59 = vpop.permute.xlu0 %1135 }
 0x1ef   : > { %2320 = vset.pattern.permute.xlu1 %v2356_v41 }
 0x1f0   : > { %1869 = vperm.xlu1 %2320, %v2710_v7  }
 0x1f2   : > { %v2851_v31 = vpop.permute.xlu0 %1166 }
 0x1f3   : > { %v1170_v55 = vsel %vm574_vm6, %v2851_v31, %v2783_v48 }
 0x1f4   : > { %2321 = vset.pattern.permute.xlu1 %v2346_v16  ;;  %v749_v16 = vsel %vm340_vm1, %v2715_v26, %v2717_v27 }
 0x1f5   : > { %v778_v10 = vmul.f32 %v770_v46, %v749_v16  ;;  %v1104_v46 = vsel %vm536_vm5, %v2804_v47, %v2763_v42  ;;  %v2868_v16 = vld [vmem:[%s3556_s2 + $0x7] ss:$8 sm:$0xf] }
 0x1f6   : > { %v1132_v60 = vmul.f32 %v1121_v38, %v1104_v46  ;;  %v1187_v52 = vrot.slane %v2868_v16, %v2833_v1  ;;  %v2881_v56 = vpop.permute.xlu0 %1201  ;;  %v887_v38 = vrot.slane %v2800_v51, %v2423_v5  ;;  %v1013_v46 = vrot.slane %v2671_v25, %v2423_v5 }
 0x1f7   : > { %v799_v54 = vrot.slane %v778_v10, %v2423_v5  ;;  %v997_v10 = vmul.f32 %v993_v30, %v2774_v45  ;;  %3569 = vst [vmem:[#allocation3_spill] sm:$0xff] %v2881_v56  ;;  %v1009_v30 = vrot.slane %v2665_v23, %v2423_v5 }
 0x1f8   : > { %v1149_v63 = vrot.slane %v1132_v60, %v2423_v5  ;;  %v2890_v0 = vmul.f32 %v1187_v52, %v1170_v55  ;;  %v953_v60 = vrot.slane %v2813_v53, %v2423_v5 }
 0x1f9   : > { %v803_v61 = vmul.f32 %v799_v54, %v2723_v28  ;;  %v2934_v55 = vmul.f32 %v1009_v30, %v2749_v13  ;;  %v762_v30 = vrot.slane %v2772_v14, %v2431_v6 }
 0x1fa   : > { %3570 = vst [vmem:[#allocation4_spill] sm:$0xff] %v2890_v0 }
 0x1fb   : > { %v869_v21 = vadd.f32 %v865_v62, %v803_v61  ;;  %v1083_v61 = vrot.slane %v1066_v36, %v2423_v5  ;;  %v821_v62 = vrot.slane %v2779_v24, %v2423_v5  ;;  %v895_v36 = vrot.slane %v2800_v51, %v2833_v1 }
 0x1fd   : > { %v935_v50 = vadd.f32 %v931_v29, %v869_v21  ;;  %v758_v21 = vrot.slane %v2772_v14, %v2423_v5  ;;  %v2916_v49 = vmul.f32 %v1083_v61, %v2758_v11  ;;  %v1047_v61 = vrot.slane %v2838_v8, %v2423_v5 }
 0x1fe   : > { %v2815_v22 = vpop.permute.xlu1 %741  ;;  %v2918_v23 = vpop.permute.xlu0 %1096 }
 0x1ff   : > { %v1001_v58 = vadd.f32 %v997_v10, %v935_v50  ;;  %v752_v3 = vsel %vm340_vm1, %v2717_v27, %v2815_v22  ;;  %v2925_v10 = vmul.f32 %v1149_v63, %v2827_v59  ;;  %v2949_v63 = vmul.f32 %v1013_v46, %v2749_v13 }
 0x200   : > { %v775_v25 = vmul.f32 %v758_v21, %v752_v3  ;;  %v829_v13 = vrot.slane %v2779_v24, %v2833_v1 }
 0x201   : > { %3571 = vst [vmem:[#allocation5_spill] sm:$0xff] %v2925_v10 }
 0x202   : > { %v2825_v34 = vpop.permute.xlu1 %804  ;;  %v787_v3 = vrot.slane %v775_v25, %v2423_v5  ;;  %v1033_v46 = vpop.permute.xlu0 %1032  ;;  %v961_v25 = vrot.slane %v2813_v53, %v2833_v1 }
 0x203   : > { %v815_v20 = vsel %vm376_vm0, %v2725_v44, %v2825_v34  ;;  %v2913_v44 = vadd.f32 %v1025_v57, %v1001_v58 }
 0x204   : > { %v838_v50 = vmul.f32 %v821_v62, %v815_v20  ;;  %v1059_v62 = vrot.slane %v2838_v8, %v2766_v43  ;;  %v800_v7 = vmul.f32 %v787_v3, %v2723_v28 }
 0x206   : > { %v2840_v18 = vpop.permute.xlu1 %870  ;;  %v849_v21 = vrot.slane %v838_v50, %v2423_v5  ;;  %v891_v50 = vrot.slane %v2800_v51, %v2431_v6  ;;  %v1107_v51 = vsel %vm536_vm5, %v2763_v42, %v2918_v23 }
 0x207   : > { %v881_v27 = vsel %vm414_vm2, %v2733_v12, %v2840_v18  ;;  %v1051_v12 = vrot.slane %v2838_v8, %v2431_v6  ;;  %v825_v8 = vrot.slane %v2779_v24, %v2431_v6 }
 0x208   : > { %v904_v58 = vmul.f32 %v887_v38, %v881_v27 }
 0x20a   : > { %v2859_v41 = vpop.permute.xlu1 %936 }
 0x20b   : > { %v947_v57 = vsel %vm452_vm3, %v2740_v37, %v2859_v41  ;;  %v766_v37 = vrot.slane %v2772_v14, %v2833_v1  ;;  %v957_v14 = vrot.slane %v2813_v53, %v2431_v6  ;;  %v862_v53 = vmul.f32 %v849_v21, %v2738_v33 }
 0x20c   : > { %v970_v38 = vmul.f32 %v953_v60, %v947_v57  ;;  %v915_v60 = vrot.slane %v904_v58, %v2423_v5 }
 0x20d   : > { %v866_v56 = vadd.f32 %v862_v53, %v800_v7 }
 0x20e   : > { %v2875_v54 = vpop.permute.xlu1 %1030 }
 0x20f   : > { %v1040_v42 = vsel %vm498_vm4, %v2875_v54, %v1033_v46 }
 0x212   : > { %v2898_v29 = vpop.permute.xlu1 %1162 }
 0x216   : > { %v2931_v52 = vpop.permute.xlu1 %1228 }
 0x217   : > { %3572 = vst [vmem:[#allocation6_spill] sm:$0xff] %v2931_v52 }
 0x21a   : > { %v744_v27 = vpop.permute.xlu1 %743 }
 0x21b   : > { %v750_v57 = vsel %vm340_vm1, %v744_v27, %v2715_v26  ;;  %v751_v24 = vsel %vm340_vm1, %v2815_v22, %v744_v27  ;;  %v1039_v22 = vsel %vm498_vm4, %v1033_v46, %v2752_v39  ;;  %v981_v27 = vrot.slane %v970_v38, %v2423_v5 }
 0x21c   : > { %v776_v21 = vmul.f32 %v762_v30, %v751_v24  ;;  %v777_v0 = vmul.f32 %v766_v37, %v750_v57  ;;  %v3003_v26 = vmul.f32 %v1125_v19, %v1107_v51  ;;  %v928_v39 = vmul.f32 %v915_v60, %v2754_v40 }
 0x21d   : > { %v3006_v52 = vmul.f32 %v1051_v12, %v1039_v22  ;;  %v1041_v30 = vsel %vm498_vm4, %v2791_v9, %v2875_v54  ;;  %v994_v37 = vmul.f32 %v981_v27, %v2774_v45 }
 0x21e   : > { %v807_v20 = vpop.permute.xlu1 %806  ;;  %v791_v7 = vrot.slane %v776_v21, %v2423_v5  ;;  %v795_v12 = vrot.slane %v777_v0, %v2423_v5  ;;  %v1153_v54 = vrot.slane %v3003_v26, %v2423_v5  ;;  %v1067_v57 = vmul.f32 %v1059_v62, %v1041_v30 }
 0x21f   : > { %v813_v58 = vsel %vm376_vm0, %v807_v20, %v2730_v2  ;;  %v814_v3 = vsel %vm376_vm0, %v2825_v34, %v807_v20  ;;  %v1183_v2 = vrot.slane %v2868_v16, %v2431_v6  ;;  %v1064_v34 = vmul.f32 %v1047_v61, %v1040_v42 }
 0x220   : > { %v839_v38 = vmul.f32 %v825_v8, %v814_v3  ;;  %v840_v10 = vmul.f32 %v829_v13, %v813_v58  ;;  %v932_v61 = vadd.f32 %v928_v39, %v866_v56  ;;  %v801_v56 = vmul.f32 %v791_v7, %v2723_v28 }
 0x221   : > { %v1087_v27 = vrot.slane %v1067_v57, %v2423_v5 }
 0x222   : > { %v853_v19 = vrot.slane %v839_v38, %v2423_v5  ;;  %v857_v20 = vrot.slane %v840_v10, %v2423_v5  ;;  %v873_v8 = vpop.permute.xlu1 %872  ;;  %v1079_v10 = vrot.slane %v3006_v52, %v2423_v5  ;;  %v998_v51 = vadd.f32 %v994_v37, %v932_v61 }
 0x223   : > { %v879_v13 = vsel %vm414_vm2, %v873_v8, %v2746_v4  ;;  %v880_v9 = vsel %vm414_vm2, %v2840_v18, %v873_v8  ;;  %v1075_v4 = vrot.slane %v1064_v34, %v2423_v5  ;;  %v3573_v34 = vrot.slane %v2845_v17, %v2423_v5 }
 0x224   : > { %v905_v46 = vmul.f32 %v891_v50, %v880_v9  ;;  %v906_v60 = vmul.f32 %v895_v36, %v879_v13  ;;  %v863_v0 = vmul.f32 %v853_v19, %v2738_v33  ;;  %v864_v24 = vmul.f32 %v857_v20, %v2738_v33 }
 0x225   : > { %v802_v36 = vmul.f32 %v795_v12, %v2723_v28  ;;  %v1173_v28 = vsel %vm574_vm6, %v2783_v48, %v2898_v29  ;;  %v1088_v3 = vmul.f32 %v1075_v4, %v2758_v11  ;;  %v3574_v20 = vrot.slane %v2845_v17, %v2431_v6 }
 0x226   : > { %v919_v53 = vrot.slane %v905_v46, %v2423_v5  ;;  %v923_v18 = vrot.slane %v906_v60, %v2423_v5  ;;  %v939_v58 = vpop.permute.xlu1 %938  ;;  %v867_v42 = vadd.f32 %v863_v0, %v801_v56  ;;  %v1091_v7 = vmul.f32 %v1087_v27, %v2758_v11 }
 0x227   : > { %v945_v52 = vsel %vm452_vm3, %v939_v58, %v2760_v15  ;;  %v946_v33 = vsel %vm452_vm3, %v2859_v41, %v939_v58  ;;  %v868_v21 = vadd.f32 %v864_v24, %v802_v36  ;;  %v1026_v15 = vadd.f32 %v2934_v55, %v998_v51 }
 0x228   : > { %v929_v62 = vmul.f32 %v919_v53, %v2754_v40  ;;  %v930_v50 = vmul.f32 %v923_v18, %v2754_v40  ;;  %v971_v26 = vmul.f32 %v957_v14, %v946_v33  ;;  %v972_v22 = vmul.f32 %v961_v25, %v945_v52  ;;  %v2242_v14 = vld [vmem:[%s3556_s2 + $0x20] ss:$8 sm:$0xf] }
 0x229   : > { %v1249_v13 = vrot.slane %v2242_v14, %v2431_v6  ;;  %v1157_v17 = vmul.f32 %v1153_v54, %v2827_v59  ;;  %v1253_v24 = vrot.slane %v2242_v14, %v2833_v1  ;;  %v1089_v51 = vmul.f32 %v1079_v10, %v2758_v11 }
 0x22a   : > { %v985_v41 = vrot.slane %v971_v26, %v2423_v5  ;;  %v989_v39 = vrot.slane %v972_v22, %v2423_v5  ;;  %v1099_v40 = vpop.permute.xlu1 %1098  ;;  %v933_v25 = vadd.f32 %v929_v62, %v867_v42  ;;  %v934_v38 = vadd.f32 %v930_v50, %v868_v21  ;;  %v3577_v50 = vld [vmem:[#allocation6_spill] sm:$0xff] }
 0x22b   : > { %v1105_v48 = vsel %vm536_vm5, %v1099_v40, %v2804_v47  ;;  %v1106_v55 = vsel %vm536_vm5, %v2918_v23, %v1099_v40  ;;  %v3575_v47 = vrot.slane %v2868_v16, %v2766_v43  ;;  %v1245_v23 = vrot.slane %v2242_v14, %v2423_v5 }
 0x22c   : > { %v995_v30 = vmul.f32 %v985_v41, %v2774_v45  ;;  %v996_v37 = vmul.f32 %v989_v39, %v2774_v45  ;;  %v1130_v19 = vmul.f32 %v3573_v34, %v1106_v55  ;;  %v1131_v8 = vmul.f32 %v3574_v20, %v1105_v48 }
 0x22d   : > { %v1199_v12 = vmul.f32 %v3575_v47, %v1173_v28  ;;  %v1092_v4 = vadd.f32 %v1088_v3, %v1026_v15  ;;  %v3576_v18 = vrot.slane %v2868_v16, %v2423_v5  ;;  %v1095_v54 = vadd.f32 %v1091_v7, %v2913_v44 }
 0x22e   : > { %v999_v9 = vadd.f32 %v995_v30, %v933_v25  ;;  %v1000_v45 = vadd.f32 %v996_v37, %v934_v38  ;;  %v1141_v61 = vrot.slane %v1130_v19, %v2423_v5  ;;  %v1145_v46 = vrot.slane %v1131_v8, %v2423_v5  ;;  %v1165_v60 = vpop.permute.xlu1 %1164  ;;  %v3579_v25 = vld [vmem:[#allocation5_spill] sm:$0xff]  ;;  %v3580_v8 = vld [vmem:[#allocation4_spill] sm:$0xff] }
 0x22f   : > { %v1171_v57 = vsel %vm574_vm6, %v1165_v60, %v2851_v31  ;;  %v1172_v0 = vsel %vm574_vm6, %v2898_v29, %v1165_v60  ;;  %v1233_v29 = vpop.permute.xlu0 %1232  ;;  %v1219_v11 = vrot.slane %v1199_v12, %v2423_v5  ;;  %v3581_v7 = vrot.slane %v3580_v8, %v2423_v5 }
 0x230   : > { %v1028_v53 = vadd.f32 %v2907_v35, %v1000_v45  ;;  %v1196_v58 = vmul.f32 %v3576_v18, %v1172_v0  ;;  %v1154_v56 = vmul.f32 %v1141_v61, %v2827_v59  ;;  %v1197_v31 = vmul.f32 %v1183_v2, %v1171_v57  ;;  %v321_v0 = vld [vmem:[%s3560_s6] sm:$0x3] }
 0x231   : > { %v1027_v36 = vadd.f32 %v2949_v63, %v999_v9  ;;  %v1155_v35 = vmul.f32 %v1145_v46, %v2827_v59  ;;  %v3578_v63 = vld [vmem:[#allocation3_spill] sm:$0xff]  ;;  %v1161_v59 = vadd.f32 %v1157_v17, %v1095_v54  ;;  %v2357_v18 = vmov 17  }
 0x232   : > { %v1094_v10 = vadd.f32 %v2916_v49, %v1028_v53  ;;  %v1207_v52 = vrot.slane %v1196_v58, %v2423_v5  ;;  %v1231_v33 = vpop.permute.xlu1 %1230  ;;  %v1211_v44 = vrot.slane %v1197_v31, %v2423_v5  ;;  %v1257_v49 = vrot.slane %v2242_v14, %v2766_v43  ;;  %2322 = vset.pattern.permute.xlu0 %v2357_v18 }
 0x233   : > { %v1237_v62 = vsel %vm612_vm7, %v1231_v33, %v1233_v29  ;;  %v1238_v16 = vsel %vm612_vm7, %v3577_v50, %v1231_v33  ;;  %v1093_v2 = vadd.f32 %v1089_v51, %v1027_v36  ;;  %v1268_v28 = vpop.permute.xlu0 %1267  ;;  %v1158_v15 = vadd.f32 %v1154_v56, %v1092_v4 }
 0x234   : > { %v1220_v26 = vmul.f32 %v1207_v52, %v3578_v63  ;;  %v1262_v22 = vmul.f32 %v1245_v23, %v1238_v16  ;;  %v1263_v27 = vmul.f32 %v1249_v13, %v1237_v62  ;;  %v1221_v21 = vmul.f32 %v1211_v44, %v3578_v63 }
 0x235   : > { %v1159_v42 = vadd.f32 %v1155_v35, %v1093_v2  ;;  %v1223_v3 = vmul.f32 %v1219_v11, %v3578_v63  ;;  %v1160_v38 = vadd.f32 %v3579_v25, %v1094_v10  ;;  %v1222_v47 = vmul.f32 %v3581_v7, %v3578_v63  ;;  %v3582_v35 = vld [vmem:[#allocation2_spill] sm:$0xff] }
 0x236   : > { %v1273_v41 = vrot.slane %v1262_v22, %v2423_v5  ;;  %v1277_v39 = vrot.slane %v1263_v27, %v2423_v5  ;;  %v1235_v40 = vpop.permute.xlu1 %1234  ;;  %v1224_v30 = vadd.f32 %v1220_v26, %v1158_v15 }
 0x237   : > { %v1236_v48 = vsel %vm612_vm7, %v1233_v29, %v1235_v40  ;;  %v1239_v14 = vsel %vm612_vm7, %v1235_v40, %v3577_v50  ;;  %v1225_v55 = vadd.f32 %v1221_v21, %v1159_v42  ;;  %v1227_v45 = vadd.f32 %v1223_v3, %v1161_v59  ;;  %v1530_v62 = vpop.permute.xlu0 %1529 }
 0x238   : > { %v1264_v37 = vmul.f32 %v1253_v24, %v1236_v48  ;;  %v1265_v34 = vmul.f32 %v1257_v49, %v1239_v14  ;;  %v1286_v19 = vmul.f32 %v1273_v41, %v1268_v28  ;;  %v1287_v20 = vmul.f32 %v1277_v39, %v1268_v28 }
 0x239   : > { %v1226_v61 = vadd.f32 %v1222_v47, %v1160_v38 }
 0x23a   : > { %v1281_v12 = vrot.slane %v1264_v37, %v2423_v5  ;;  %v1285_v23 = vrot.slane %v1265_v34, %v2423_v5  ;;  %v1291_v13 = vadd.f32 %v1287_v20, %v1225_v55  ;;  %v1290_v9 = vadd.f32 %v1286_v19, %v1224_v30 }
 0x23b   : > { %v1602_v16 = vpop.permute.xlu0 %1601 }
 0x23c   : > { %v1288_v46 = vmul.f32 %v1281_v12, %v1268_v28  ;;  %v1289_v60 = vmul.f32 %v1285_v23, %v1268_v28  ;;  %v1295_v17 = vmax.f32 %v1291_v13, 0.0  ;;  %v1294_v57 = vmax.f32 %v1290_v9, 0.0 }
 0x23e   : > { %v1292_v24 = vadd.f32 %v1288_v46, %v1226_v61  ;;  %v1293_v51 = vadd.f32 %v1289_v60, %v1227_v45  ;;  %2243 = vmatprep.subr.msk.mxu1 %vm652_vm8, %v1295_v17 }
 0x23f   : > { %2244 = vmatpush1.msk.msra.mxu1 %vm652_vm8, %v1294_v57  ;;  %v3220_v63 = vpop.permute.xlu0 %1641 }
 0x240   : > { %v1296_v4 = vmax.f32 %v1292_v24, 0.0  ;;  %v1297_v53 = vmax.f32 %v1293_v51, 0.0  ;;  %2245 = vmatmul.mubr.msk.f32.vlgmr.msra.gmra.mxu1 %vm648_vm9, %v321_v0 }
 0x242   : > { %2246 = vmatprep.subr.msk.mxu0 %vm652_vm8, %v1297_v53 }
 0x243   : > { %2247 = vmatpush1.msk.msra.mxu0 %vm652_vm8, %v1296_v4  ;;  %v1490_v52 = vpop.permute.xlu1 %1489  ;;  %v3224_v22 = vpop.permute.xlu0 %1701 }
 0x244   : > { %2248 = vmatmul.mubr.msk.f32.vlgmr.msra.gmra.mxu0 %vm648_vm9, %v321_v0  ;;  %v1495_v38 = vrot.slane %v1490_v52, %v2423_v5 }
 0x247   : > { %v3228_v49 = vpop.permute.xlu0 %1741 }
 0x248   : > { %v1474_v33 = vpop.permute.xlu1 %1473 }
 0x249   : > { %v1479_v37 = vrot.slane %v1474_v33, %v2423_v5 }
 0x24b   : > { %v3230_v28 = vpop.permute.xlu0 %1813 }
 0x24d   : > { %v1546_v44 = vpop.permute.xlu1 %1545 }
 0x24f   : > { %v3234_v21 = vpop.permute.xlu0 %1853 }
 0x252   : > { %v3214_v50 = vpop.permute.xlu1 %1585 }
 0x257   : > { %v3218_v2 = vpop.permute.xlu1 %1657 }
 0x25c   : > { %v3222_v26 = vpop.permute.xlu1 %1685 }
 0x261   : > { %v3226_v27 = vpop.permute.xlu1 %1757 }
 0x266   : > { %v1798_v59 = vpop.permute.xlu1 %1797 }
 0x267   : > { %v3261_v0 = vrot.slane %v1798_v59, %v2423_v5  ;;  %v3286_v59 = vrot.slane %v1546_v44, %v2423_v5 }
 0x26b   : > { %v3232_v42 = vpop.permute.xlu1 %1869 }
 0x300   : > { %v1379_v58 = vpop.f32.mrf.mxu1 }
 0x301   : > { %v3134_v54 = vmax.f32 %v1379_v58, 0.0 }
 0x302   : > { %v1381_v56 = vpop.f32.mrf.mxu1 }
 0x303   : > { %v3136_v31 = vmax.f32 %v1381_v56, 0.0 }
 0x304   : > { %v1450_v29 = vpop.f32.mrf.mxu0 }
 0x305   : > { %v3138_v36 = vmax.f32 %v1450_v29, 0.0  ;;  %1982 = vmatprep.subr.mxu1 %v3136_v31  ;;  %2016 = vmatprep.mubr.f32.mxu1 %v3136_v31 }
 0x306   : > { %v1452_v11 = vpop.f32.mrf.mxu0  ;;  %1983 = vmatpush1.xpose.msra.mxu1 %v3134_v54 }
 0x307   : > { %v3143_v10 = vmax.f32 %v1452_v11, 0.0  ;;  %1520 = vrot.lane.b32.xlu0 %v3138_v36, %s2335_s14  ;;  %1463 = vrot.lane.b32.xlu1 %v3138_v36, %s2334_s13 }
 0x309   : > { %2052 = vmatprep.subr.mxu0 %v3143_v10  ;;  %2086 = vmatprep.mubr.f32.mxu0 %v3143_v10 }
 0x30a   : > { %2053 = vmatpush1.xpose.msra.mxu0 %v3138_v36  ;;  %2017 = vmatmul.mubr.f32.vlgmr.msra.gmra.mxu1 %v3134_v54 }
 0x30b   : > { %1632 = vrot.lane.b32.xlu0 %v3138_v36, %s2338_s16  ;;  %1576 = vrot.lane.b32.xlu1 %v3138_v36, %s2337_s15 }
 0x30d   : > { %2087 = vmatmul.mubr.f32.vlgmr.msra.gmra.mxu0 %v3138_v36 }
 0x30f   : > { %1732 = vrot.lane.b32.xlu0 %v3138_v36, %s2340_s17  ;;  %1788 = vrot.lane.b32.xlu1 %v3138_v36, %s2343_s18 }
 0x313   : > { %1465 = vrot.lane.b32.xlu0 %v3143_v10, %s2334_s13  ;;  %1459 = vrot.lane.b32.xlu1 %v3134_v54, %s2334_s13 }
 0x317   : > { %1578 = vrot.lane.b32.xlu0 %v3143_v10, %s2337_s15  ;;  %1516 = vrot.lane.b32.xlu1 %v3134_v54, %s2335_s14 }
 0x31b   : > { %1572 = vrot.lane.b32.xlu1 %v3134_v54, %s2337_s15  ;;  %1461 = vrot.lane.b32.xlu0 %v3136_v31, %s2334_s13 }
 0x31f   : > { %1628 = vrot.lane.b32.xlu1 %v3134_v54, %s2338_s16  ;;  %1790 = vrot.lane.b32.xlu0 %v3143_v10, %s2343_s18 }
 0x323   : > { %1728 = vrot.lane.b32.xlu1 %v3134_v54, %s2340_s17  ;;  %1574 = vrot.lane.b32.xlu0 %v3136_v31, %s2337_s15 }
 0x327   : > { %1784 = vrot.lane.b32.xlu1 %v3134_v54, %s2343_s18  ;;  %1925 = vperm.xlu0 %2322, %v3582_v35  }
 0x32b   : > { %1522 = vrot.lane.b32.xlu1 %v3143_v10, %s2335_s14  ;;  %1844 = vrot.lane.b32.xlu0 %v3138_v36, %s2344_s19 }
 0x32f   : > { %1634 = vrot.lane.b32.xlu1 %v3143_v10, %s2338_s16  ;;  %1786 = vrot.lane.b32.xlu0 %v3136_v31, %s2343_s18 }
 0x333   : > { %1734 = vrot.lane.b32.xlu1 %v3143_v10, %s2340_s17  ;;  %1896 = vrot.lane.b32.xlu0 %v3134_v54, %s2347_s20 }
 0x337   : > { %1909 = vperm.xlu1 %2321, %v3582_v35   ;;  %1900 = vrot.lane.b32.xlu0 %v3138_v36, %s2347_s20 }
 0x33b   : > { %1518 = vrot.lane.b32.xlu1 %v3136_v31, %s2335_s14 }
 0x33f   : > { %1840 = vrot.lane.b32.xlu1 %v3134_v54, %s2344_s19 }
 0x343   : > { %1630 = vrot.lane.b32.xlu1 %v3136_v31, %s2338_s16 }
 0x347   : > { %1846 = vrot.lane.b32.xlu1 %v3143_v10, %s2344_s19 }
 0x34b   : > { %1730 = vrot.lane.b32.xlu1 %v3136_v31, %s2340_s17  ;;  %s315_s17 = scalar_lea.vmem %s3562_s8, %s3584_s28 }
 0x34f   : > { %1842 = vrot.lane.b32.xlu1 %v3136_v31, %s2344_s19 }
 0x353   : > { %1898 = vrot.lane.b32.xlu1 %v3136_v31, %s2347_s20 }
 0x357   : > { %1902 = vrot.lane.b32.xlu1 %v3143_v10, %s2347_s20 }
 0x379   : > { %v1464_v15 = vpop.permute.xlu1 %1463  ;;  %v3236_v3 = vpop.permute.xlu0 %1520 }
 0x37d   : > { %v3238_v41 = vpop.permute.xlu1 %1576  ;;  %v3240_v39 = vpop.permute.xlu0 %1632 }
 0x381   : > { %v3242_v40 = vpop.permute.xlu1 %1788  ;;  %v3244_v25 = vpop.permute.xlu0 %1732 }
 0x385   : > { %v1460_v48 = vpop.permute.xlu1 %1459  ;;  %v1466_v14 = vpop.permute.xlu0 %1465 }
 0x386   : > { %v1467_v55 = vsel %vm340_vm1, %v1464_v15, %v1466_v14  ;;  %v1470_v30 = vsel %vm340_vm1, %v1466_v14, %v1460_v48 }
 0x387   : > { %v1496_v34 = vmul.f32 %v1495_v38, %v1470_v30  ;;  %v1499_v19 = vmul.f32 %v1495_v38, %v1467_v55  ;;  %v1480_v20 = vmul.f32 %v1479_v37, %v1470_v30  ;;  %v1483_v8 = vmul.f32 %v1479_v37, %v1467_v55 }
 0x388   : > { %v3298_v55 = vrot.slane %v1602_v16, %v2423_v5  ;;  %v3314_v16 = vrot.slane %v3214_v50, %v2423_v5 }
 0x389   : > { %v1504_v7 = vrot.slane %v1496_v34, 1  ;;  %v1507_v47 = vrot.slane %v1499_v19, 1  ;;  %v3252_v12 = vpop.permute.xlu1 %1516  ;;  %v1579_v23 = vpop.permute.xlu0 %1578 }
 0x38b   : > { %v1512_v13 = vadd.f32 %v1504_v7, %v1480_v20  ;;  %v1515_v9 = vadd.f32 %v1507_v47, %v1483_v8 }
 0x38d   : > { %v3254_v45 = vpop.permute.xlu1 %1572  ;;  %v1462_v61 = vpop.permute.xlu0 %1461 }
 0x38e   : > { %v1468_v46 = vsel %vm340_vm1, %v1462_v61, %v1464_v15  ;;  %v1469_v60 = vsel %vm340_vm1, %v1460_v48, %v1462_v61  ;;  %v3289_v15 = vrot.slane %v1530_v62, %v2423_v5  ;;  %v1583_v48 = vsel %vm414_vm2, %v1579_v23, %v3254_v45 }
 0x38f   : > { %v1497_v17 = vmul.f32 %v1495_v38, %v1469_v60  ;;  %v1498_v57 = vmul.f32 %v1495_v38, %v1468_v46  ;;  %v1481_v24 = vmul.f32 %v1479_v37, %v1469_v60  ;;  %v1482_v53 = vmul.f32 %v1479_v37, %v1468_v46 }
 0x390   : > { %v1580_v38 = vsel %vm414_vm2, %v3238_v41, %v1579_v23  ;;  %v1608_v7 = vmul.f32 %v3298_v55, %v1583_v48 }
 0x391   : > { %v3263_v51 = vpop.permute.xlu1 %1628  ;;  %v3265_v4 = vpop.permute.xlu0 %1790  ;;  %v1505_v18 = vrot.slane %v1497_v17, 1  ;;  %v1506_v58 = vrot.slane %v1498_v57, 1  ;;  %v1611_v8 = vmul.f32 %v3298_v55, %v1580_v38  ;;  %v3320_v17 = vrot.slane %v3218_v2, %v2423_v5 }
 0x392   : > { %v3271_v56 = vsel %vm536_vm5, %v3242_v40, %v3265_v4  ;;  %v3334_v2 = vrot.slane %v3220_v63, %v2423_v5 }
 0x393   : > { %v3275_v29 = vmul.f32 %v3261_v0, %v3271_v56  ;;  %v3277_v11 = vadd.f32 %v1505_v18, %v1481_v24  ;;  %v3279_v35 = vadd.f32 %v1506_v58, %v1482_v53  ;;  %v1619_v58 = vrot.slane %v1611_v8, 1 }
 0x394   : > { %v1691_v8 = vrot.slane %v3222_v26, %v2423_v5 }
 0x395   : > { %v3281_v52 = vpop.permute.xlu1 %1728  ;;  %v3300_v30 = vpop.permute.xlu0 %1574 }
 0x396   : > { %v1695_v26 = vmul.f32 %v1691_v8, %v3143_v10 }
 0x399   : > { %v3283_v33 = vpop.permute.xlu1 %1784 }
 0x39d   : > { %v1523_v14 = vpop.permute.xlu1 %1522 }
 0x39e   : > { %v1524_v44 = vsel %vm376_vm0, %v3236_v3, %v1523_v14  ;;  %v1527_v62 = vsel %vm376_vm0, %v1523_v14, %v3252_v12  ;;  %v1616_v14 = vrot.slane %v1608_v7, 1 }
 0x39f   : > { %v1536_v37 = vmul.f32 %v3289_v15, %v1527_v62  ;;  %v1539_v34 = vmul.f32 %v3289_v15, %v1524_v44  ;;  %v1552_v19 = vmul.f32 %v3286_v59, %v1527_v62  ;;  %v1555_v20 = vmul.f32 %v3286_v59, %v1524_v44 }
 0x3a1   : > { %v1540_v47 = vadd.f32 %v1536_v37, %v1512_v13  ;;  %v1543_v23 = vadd.f32 %v1539_v34, %v1515_v9  ;;  %v1560_v61 = vrot.slane %v1552_v19, 1  ;;  %v1563_v46 = vrot.slane %v1555_v20, 1  ;;  %v1635_v60 = vpop.permute.xlu1 %1634 }
 0x3a2   : > { %v1636_v57 = vsel %vm452_vm3, %v3240_v39, %v1635_v60  ;;  %v1639_v50 = vsel %vm452_vm3, %v1635_v60, %v3263_v51  ;;  %v3328_v24 = vpop.permute.xlu0 %1925  ;;  %v1595_v13 = vmul.f32 %v3314_v16, %v1580_v38  ;;  %v1592_v9 = vmul.f32 %v3314_v16, %v1583_v48 }
 0x3a3   : > { %v1568_v53 = vadd.f32 %v1560_v61, %v1540_v47  ;;  %v1571_v18 = vadd.f32 %v1563_v46, %v1543_v23  ;;  %v1664_v37 = vmul.f32 %v3320_v17, %v1639_v50  ;;  %v1667_v34 = vmul.f32 %v3320_v17, %v1636_v57 }
 0x3a4   : > { %v1707_v19 = vrot.slane %v3224_v22, %v2423_v5  ;;  %v1648_v47 = vmul.f32 %v3334_v2, %v1639_v50  ;;  %v1651_v63 = vmul.f32 %v3334_v2, %v1636_v57 }
 0x3a5   : > { %v1596_v44 = vadd.f32 %v1592_v9, %v1568_v53  ;;  %v1599_v62 = vadd.f32 %v1595_v13, %v1571_v18  ;;  %v1735_v23 = vpop.permute.xlu1 %1734  ;;  %v1672_v13 = vrot.slane %v1664_v37, 1  ;;  %v1675_v22 = vrot.slane %v1667_v34, 1 }
 0x3a6   : > { %v3340_v38 = vpop.permute.xlu0 %1844  ;;  %v1708_v7 = vmul.f32 %v1707_v19, %v3134_v54  ;;  %v1711_v61 = vmul.f32 %v1707_v19, %v3143_v10  ;;  %v1692_v9 = vmul.f32 %v1691_v8, %v3134_v54  ;;  %v3351_v53 = vrot.slane %v3226_v27, %v2423_v5 }
 0x3a7   : > { %v1624_v48 = vadd.f32 %v1616_v14, %v1596_v44  ;;  %v1627_v20 = vadd.f32 %v1619_v58, %v1599_v62  ;;  %v1739_v57 = vsel %vm498_vm4, %v1735_v23, %v3281_v52  ;;  %v3364_v54 = vrot.slane %v3228_v49, %v2423_v5 }
 0x3a8   : > { %v1716_v44 = vrot.slane %v1708_v7, 1  ;;  %v1719_v34 = vrot.slane %v1711_v61, 1  ;;  %v1767_v10 = vmul.f32 %v3351_v53, %v1739_v57  ;;  %v1795_v49 = vsel %vm536_vm5, %v3265_v4, %v3283_v33 }
 0x3a9   : > { %v1652_v46 = vadd.f32 %v1648_v47, %v1624_v48  ;;  %v1655_v60 = vadd.f32 %v1651_v63, %v1627_v20  ;;  %v1751_v20 = vmul.f32 %v3364_v54, %v1739_v57  ;;  %v1807_v7 = vmul.f32 %v3261_v0, %v1795_v49 }
 0x3aa   : > { %v1787_v50 = vpop.permute.xlu0 %1786  ;;  %v1775_v63 = vrot.slane %v1767_v10, 1  ;;  %v1581_v4 = vsel %vm414_vm2, %v3300_v30, %v3238_v41 }
 0x3ab   : > { %v1680_v18 = vadd.f32 %v1672_v13, %v1652_v46  ;;  %v1683_v58 = vadd.f32 %v1675_v22, %v1655_v60  ;;  %v3360_v14 = vsel %vm536_vm5, %v1787_v50, %v3242_v40  ;;  %v1819_v13 = vrot.slane %v3230_v28, %v2423_v5 }
 0x3ac   : > { %v3368_v27 = vmul.f32 %v3261_v0, %v3360_v14  ;;  %v3387_v22 = vrot.slane %v3232_v42, %v2423_v5  ;;  %v3401_v28 = vmul.f32 %v1707_v19, %v3138_v36 }
 0x3ad   : > { %v1696_v62 = vadd.f32 %v1692_v9, %v1680_v18  ;;  %v1699_v37 = vadd.f32 %v1695_v26, %v1683_v58  ;;  %v1582_v9 = vsel %vm414_vm2, %v3254_v45, %v3300_v30  ;;  %v3398_v26 = vmul.f32 %v1707_v19, %v3136_v31 }
 0x3ae   : > { %v3416_v19 = vrot.slane %v3234_v21, %v2423_v5  ;;  %v1694_v21 = vmul.f32 %v1691_v8, %v3138_v36 }
 0x3af   : > { %v1727_v48 = vadd.f32 %v1719_v34, %v1699_v37  ;;  %v3372_v47 = vadd.f32 %v1716_v44, %v1696_v62  ;;  %v1693_v44 = vmul.f32 %v1691_v8, %v3136_v31  ;;  %v1610_v62 = vmul.f32 %v3298_v55, %v1581_v4  ;;  %v3427_v31 = vld [vmem:[%s3556_s2 + $0x21] ss:$8 sm:$0xf] }
 0x3b0   : > { %v2098_v36 = vrot.slane %v3427_v31, %v2423_v5  ;;  %v2102_v8 = vrot.slane %v3427_v31, %v2431_v6 }
 0x3b1   : > { %v1755_v40 = vadd.f32 %v1751_v20, %v1727_v48  ;;  %v1593_v48 = vmul.f32 %v3314_v16, %v1582_v9 }
 0x3b2   : > { %v3378_v46 = vpop.permute.xlu1 %1909 }
 0x3b3   : > { %v1783_v60 = vadd.f32 %v1775_v63, %v1755_v40  ;;  %v3438_v63 = vmul.f32 %v1819_v13, %v3271_v56 }
 0x3b5   : > { %v3381_v61 = vadd.f32 %v1807_v7, %v1783_v60  ;;  %v1618_v60 = vrot.slane %v1610_v62, 1  ;;  %v2106_v62 = vrot.slane %v3427_v31, %v2833_v1 }
 0x3b6   : > { %v1519_v57 = vpop.permute.xlu1 %1518 }
 0x3b7   : > { %v1525_v42 = vsel %vm376_vm0, %v1519_v57, %v3236_v3  ;;  %v1526_v41 = vsel %vm376_vm0, %v3252_v12, %v1519_v57  ;;  %v1609_v3 = vmul.f32 %v3298_v55, %v1582_v9  ;;  %v1717_v55 = vrot.slane %v3398_v26, 1 }
 0x3b8   : > { %v1537_v18 = vmul.f32 %v3289_v15, %v1526_v41  ;;  %v1538_v58 = vmul.f32 %v3289_v15, %v1525_v42  ;;  %v1553_v45 = vmul.f32 %v3286_v59, %v1526_v41  ;;  %v1554_v30 = vmul.f32 %v3286_v59, %v1525_v42 }
 0x3b9   : > { %v1718_v59 = vrot.slane %v3401_v28, 1  ;;  %v1617_v7 = vrot.slane %v1609_v3, 1  ;;  %v1823_v57 = vmul.f32 %v1819_v13, %v1795_v49  ;;  %v3461_v49 = vmul.f32 %v1819_v13, %v3360_v14 }
 0x3ba   : > { %v1541_v12 = vadd.f32 %v1537_v18, %v3277_v11  ;;  %v1542_v37 = vadd.f32 %v1538_v58, %v3279_v35  ;;  %v1561_v34 = vrot.slane %v1553_v45, 1  ;;  %v1562_v15 = vrot.slane %v1554_v30, 1  ;;  %v3422_v10 = vpop.permute.xlu1 %1840 }
 0x3bb   : > { %v1594_v11 = vmul.f32 %v3314_v16, %v1581_v4  ;;  %v1736_v35 = vsel %vm498_vm4, %v3244_v25, %v1735_v23  ;;  %v1794_v16 = vsel %vm536_vm5, %v3283_v33, %v1787_v50 }
 0x3bc   : > { %v1569_v20 = vadd.f32 %v1561_v34, %v1541_v12  ;;  %v1570_v40 = vadd.f32 %v1562_v15, %v1542_v37  ;;  %v3448_v26 = vmul.f32 %v3351_v53, %v1736_v35  ;;  %v3458_v50 = vmul.f32 %v1819_v13, %v1794_v16 }
 0x3bd   : > { %v1831_v12 = vrot.slane %v1823_v57, 1  ;;  %v3473_v13 = vrot.slane %v3328_v24, %v2423_v5  ;;  %v1804_v15 = vmul.f32 %v3261_v0, %v1794_v16 }
 0x3be   : > { %v1597_v4 = vadd.f32 %v1593_v48, %v1569_v20  ;;  %v1598_v9 = vadd.f32 %v1594_v11, %v1570_v40  ;;  %v1631_v23 = vpop.permute.xlu1 %1630  ;;  %v1774_v34 = vrot.slane %v3448_v26, 1  ;;  %v1828_v48 = vrot.slane %v3458_v50, 1 }
 0x3bf   : > { %v1637_v56 = vsel %vm452_vm3, %v1631_v23, %v3240_v39  ;;  %v1638_v28 = vsel %vm452_vm3, %v3263_v51, %v1631_v23  ;;  %v1830_v39 = vrot.slane %v3438_v63, 1  ;;  %v1829_v11 = vrot.slane %v3461_v49, 1  ;;  %v1897_v23 = vpop.permute.xlu0 %1896 }
 0x3c0   : > { %v1625_v42 = vadd.f32 %v1617_v7, %v1597_v4  ;;  %v1626_v41 = vadd.f32 %v1618_v60, %v1598_v9  ;;  %v1649_v18 = vmul.f32 %v3334_v2, %v1638_v28  ;;  %v1650_v33 = vmul.f32 %v3334_v2, %v1637_v56 }
 0x3c1   : > { %v1665_v58 = vmul.f32 %v3320_v17, %v1638_v28  ;;  %v1666_v45 = vmul.f32 %v3320_v17, %v1637_v56  ;;  %v1750_v17 = vmul.f32 %v3364_v54, %v1736_v35  ;;  %v3482_v7 = vrot.slane %v3378_v46, %v2423_v5 }
 0x3c2   : > { %v1653_v30 = vadd.f32 %v1649_v18, %v1625_v42  ;;  %v1654_v3 = vadd.f32 %v1650_v33, %v1626_v41  ;;  %v1847_v51 = vpop.permute.xlu1 %1846  ;;  %v1839_v57 = vadd.f32 %v1831_v12, %v3381_v61 }
 0x3c3   : > { %v1673_v37 = vrot.slane %v1665_v58, 1  ;;  %v1674_v2 = vrot.slane %v1666_v45, 1  ;;  %v1851_v14 = vsel %vm574_vm6, %v1847_v51, %v3422_v10  ;;  %v1848_v24 = vsel %vm574_vm6, %v3340_v38, %v1847_v51 }
 0x3c4   : > { %v1863_v35 = vmul.f32 %v3416_v19, %v1851_v14  ;;  %v1879_v60 = vmul.f32 %v3387_v22, %v1851_v14  ;;  %v1901_v14 = vpop.permute.xlu0 %1900 }
 0x3c5   : > { %v1681_v20 = vadd.f32 %v1673_v37, %v1653_v30  ;;  %v1682_v40 = vadd.f32 %v1674_v2, %v1654_v3 }
 0x3c6   : > { %v1731_v4 = vpop.permute.xlu1 %1730  ;;  %v1887_v18 = vrot.slane %v1879_v60, 1 }
 0x3c7   : > { %v1697_v0 = vadd.f32 %v1693_v44, %v1681_v20  ;;  %v1698_v16 = vadd.f32 %v1694_v21, %v1682_v40  ;;  %v1737_v9 = vsel %vm498_vm4, %v1731_v4, %v3244_v25  ;;  %v1738_v46 = vsel %vm498_vm4, %v3281_v52, %v1731_v4 }
 0x3c8   : > { %v1748_v26 = vmul.f32 %v3364_v54, %v1738_v46  ;;  %v1749_v56 = vmul.f32 %v3364_v54, %v1737_v9  ;;  %v1764_v28 = vmul.f32 %v3351_v53, %v1738_v46  ;;  %v1878_v44 = vmul.f32 %v3387_v22, %v1848_v24 }
 0x3c9   : > { %v1726_v42 = vadd.f32 %v1718_v59, %v1698_v16  ;;  %v1725_v21 = vadd.f32 %v1717_v55, %v1697_v0  ;;  %v1765_v41 = vmul.f32 %v3351_v53, %v1737_v9  ;;  %v1867_v25 = vadd.f32 %v1863_v35, %v1839_v57 }
 0x3ca   : > { %v1752_v33 = vadd.f32 %v1748_v26, %v3372_v47  ;;  %v1772_v52 = vrot.slane %v1764_v28, 1  ;;  %v1843_v50 = vpop.permute.xlu1 %1842  ;;  %v2018_v49 = vpop.f32.mrf.mxu1  ;;  %v1862_v59 = vmul.f32 %v3416_v19, %v1848_v24  ;;  %v1886_v51 = vrot.slane %v1878_v44, 1 }
 0x3cb   : > { %v1754_v61 = vadd.f32 %v1750_v17, %v1726_v42  ;;  %v1753_v58 = vadd.f32 %v1749_v56, %v1725_v21  ;;  %v1773_v45 = vrot.slane %v1765_v41, 1  ;;  %v1849_v54 = vsel %vm574_vm6, %v1843_v50, %v3340_v38 }
 0x3cc   : > { %v1780_v55 = vadd.f32 %v1772_v52, %v1752_v33  ;;  %v1850_v53 = vsel %vm574_vm6, %v3422_v10, %v1843_v50  ;;  %v1877_v47 = vmul.f32 %v3387_v22, %v1849_v54  ;;  %v2020_v30 = vpop.f32.mrf.mxu1  ;;  %v1895_v17 = vadd.f32 %v1887_v18, %v1867_v25 }
 0x3cd   : > { %v1782_v3 = vadd.f32 %v1774_v34, %v1754_v61  ;;  %v1781_v12 = vadd.f32 %v1773_v45, %v1753_v58  ;;  %v1876_v37 = vmul.f32 %v3387_v22, %v1850_v53  ;;  %v2088_v2 = vpop.f32.mrf.mxu0  ;;  %v1861_v20 = vmul.f32 %v3416_v19, %v1849_v54 }
 0x3ce   : > { %v1808_v38 = vadd.f32 %v1804_v15, %v1780_v55  ;;  %v2134_v40 = vsub.f32 %v2088_v2, %v2018_v49  ;;  %v1899_v24 = vpop.permute.xlu1 %1898  ;;  %v1860_v60 = vmul.f32 %v3416_v19, %v1850_v53  ;;  %v1885_v22 = vrot.slane %v1877_v47, 1 }
 0x3cf   : > { %v1810_v35 = vadd.f32 %v3275_v29, %v1782_v3  ;;  %v1809_v10 = vadd.f32 %v3368_v27, %v1781_v12  ;;  %v1905_v34 = vsel %vm612_vm7, %v1899_v24, %v1901_v14  ;;  %v2090_v4 = vpop.f32.mrf.mxu0  ;;  %v1906_v15 = vsel %vm612_vm7, %v1897_v23, %v1899_v24 }
 0x3d0   : > { %v1836_v0 = vadd.f32 %v1828_v48, %v1808_v38  ;;  %v2135_v16 = vmul.f32 0.001953125, %v2134_v40  ;;  %v1884_v57 = vrot.slane %v1876_v37, 1  ;;  %v1932_v29 = vmul.f32 %v3473_v13, %v1906_v15 }
 0x3d1   : > { %v1838_v9 = vadd.f32 %v1830_v39, %v1810_v35  ;;  %v1837_v46 = vadd.f32 %v1829_v11, %v1809_v10  ;;  %v1917_v19 = vmul.f32 %v3482_v7, %v1905_v34  ;;  %v1933_v56 = vmul.f32 %v3473_v13, %v1905_v34 }
 0x3d2   : > { %v1864_v27 = vadd.f32 %v1860_v60, %v1836_v0  ;;  %v2136_v26 = vmul.f32 %v2135_v16, %v2135_v16  ;;  %v1903_v28 = vpop.permute.xlu1 %1902  ;;  %v1916_v44 = vmul.f32 %v3482_v7, %v1906_v15  ;;  %v1940_v39 = vrot.slane %v1932_v29, 1 }
 0x3d3   : > { %v1866_v48 = vadd.f32 %v1862_v59, %v1838_v9  ;;  %v1865_v42 = vadd.f32 %v1861_v20, %v1837_v46  ;;  %v1904_v21 = vsel %vm612_vm7, %v1901_v14, %v1903_v28  ;;  %v1907_v11 = vsel %vm612_vm7, %v1903_v28, %v1897_v23 }
 0x3d4   : > { %v1892_v63 = vadd.f32 %v1884_v57, %v1864_v27  ;;  %v1918_v41 = vmul.f32 %v3482_v7, %v1904_v21  ;;  %v1919_v33 = vmul.f32 %v3482_v7, %v1907_v11  ;;  %v1934_v52 = vmul.f32 %v3473_v13, %v1904_v21 }
 0x3d5   : > { %v1894_v25 = vadd.f32 %v1886_v51, %v1866_v48  ;;  %v1893_v18 = vadd.f32 %v1885_v22, %v1865_v42  ;;  %v1941_v49 = vrot.slane %v1933_v56, 1  ;;  %v1935_v61 = vmul.f32 %v3473_v13, %v1907_v11 }
 0x3d6   : > { %v1920_v50 = vadd.f32 %v1916_v44, %v1892_v63  ;;  %v2138_v58 = vsel %vm2137_vm10, %v2136_v26, 0.0  ;;  %v1923_v59 = vadd.f32 %v1919_v33, %v1895_v17  ;;  %v1942_v55 = vrot.slane %v1934_v52, 1 }
 0x3d7   : > { %v1921_v45 = vadd.f32 %v1917_v19, %v1893_v18  ;;  %v1922_v54 = vadd.f32 %v1918_v41, %v1894_v25  ;;  %2139 = vadd.xlane.f32.xlu0 %v2138_v58  ;;  %v2110_v53 = vrot.slane %v3427_v31, %v2766_v43  ;;  %v1943_v47 = vrot.slane %v1935_v61, 1 }
 0x3d8   : > { %v1948_v23 = vadd.f32 %v1940_v39, %v1920_v50 }
 0x3d9   : > { %v1949_v30 = vadd.f32 %v1941_v49, %v1921_v45  ;;  %v1950_v7 = vadd.f32 %v1942_v55, %v1922_v54  ;;  %v1951_v51 = vadd.f32 %v1943_v47, %v1923_v59 }
 0x3da   : > { %v2115_v3 = vmul.f32 %v2098_v36, %v1948_v23 }
 0x3db   : > { %v2116_v13 = vmul.f32 %v2102_v8, %v1949_v30  ;;  %v2117_v12 = vmul.f32 %v2106_v62, %v1950_v7  ;;  %v2118_v37 = vmul.f32 %v2110_v53, %v1951_v51 }
 0x3dc   : > { %v2119_v2 = vmul.f32 %v2115_v3, %v2115_v3 }
 0x3dd   : > { %v2120_v43 = vmul.f32 %v2116_v13, %v2116_v13  ;;  %v2121_v14 = vmul.f32 %v2117_v12, %v2117_v12  ;;  %v2122_v38 = vmul.f32 %v2118_v37, %v2118_v37 }
 0x3de   : > { %v2124_v17 = vsel %vm2123_vm11, %v2119_v2, 0.0 }
 0x3df   : > { %v2125_v20 = vsel %vm2123_vm11, %v2120_v43, 0.0  ;;  %v2129_v40 = vsel %vm2123_vm11, %v2121_v14, 0.0  ;;  %v2130_v36 = vsel %vm2123_vm11, %v2122_v38, 0.0 }
 0x3e0   : > { %v2126_v5 = vadd.f32 %v2125_v20, %v2124_v17  ;;  %v2131_v24 = vadd.f32 %v2130_v36, %v2129_v40 }
 0x3e2   : > { %2127 = vadd.xlane.f32.xlu1 %v2126_v5  ;;  %2132 = vadd.xlane.f32.xlu0 %v2131_v24 }
 0x460   : > { %v2140_v6 = vpop.xlane.xlu0 %2139 }
 0x461   : > { %v2142_v8 = vsel %vm2141_vm12, %v2140_v6, 0.0 }
 0x462   : > { %v2143_v1 = vrot.slane %v2142_v8, 4 }
 0x464   : > { %v2144_v31 = vadd.f32 %v2143_v1, %v2142_v8 }
 0x466   : > { %v2145_v62 = vrot.slane %v2144_v31, 2 }
 0x468   : > { %v2146_v35 = vadd.f32 %v2145_v62, %v2144_v31 }
 0x46a   : > { %v2147_v10 = vrot.slane %v2146_v35, 1 }
 0x46b   : > { %v2128_v60 = vpop.xlane.xlu1 %2127  ;;  %v2133_v34 = vpop.xlane.xlu0 %2132 }
 0x46c   : > { %v2148_v4 = vadd.f32 %v2147_v10, %v2146_v35  ;;  %v2150_v0 = vsub.f32 %v2133_v34, %v2128_v60 }
 0x46e   : > { %v2151_v22 = vmul.f32 0.0051020407, %v2150_v0  ;;  %v2149_v16 = vmul.f32 0.125, %v2148_v4 }
 0x470   : > { %v2152_v15 = vmul.f32 %v2151_v22, %v2151_v22  ;;  %v2155_v46 = vsel %vm2154_vm13, %v2149_v16, 0.0 }
 0x472   : > { %v2153_v9 = vmul.f32 0.5, %v2152_v15 }
 0x474   : > { %v2157_v57 = vsel %vm2156_vm14, %v2153_v9, 0.0 }
 0x475   : > { %v2158_v29 = vadd.f32 %v2157_v57, %v2155_v46 }
 0x477   : > { %2159 = vst [vmem:[%s315_s17] sm:$0x1] %v2158_v29 }
 0x478 PF: > { %s18_s27 = sadd.s32 1, %s2329_s27  }
 0x479   : > { %p15_p4 = scmp.ge.s32.totalorder %s18_s27, 4  }
 0x47b   :  { %17 = sbr.rel (!%p15_p4) target bundleno = 1 (0x1), region = 93 }

</bundles_post_ra>
